<compile_context>
chip_gen: v5e
topology: v5e:2x2
jax: 0.10.0
libtpu: 0.0.40
codegen_flags: <defaults>
</compile_context>

<pallas_src>
import jax
import jax.numpy as jnp
from jax import lax
from jax.experimental import pallas as pl
from jax.experimental.pallas import tpu as pltpu

EPS = 1e-5  # nn.InstanceNorm2d default eps


# ---------------------------------------------------------------------------
# Fused Pallas kernel
# ---------------------------------------------------------------------------
def _make_kernel(C, H, W, compute_dtype):
    Wp = W + 2
    Lo = H * Wp            # conv output, padded-width flat (2 junk lanes / row)
    Lp = (H + 2) * Wp      # reflect-padded image, flat
    LE = Lp + 2            # +2 trailing lanes so every tap slice stays in-bounds
    inv_hw = 1.0 / float(H * W)

    def kernel(col_ref, xp_ref, w1_ref, w2_ref, o_ref, pad_ref, acc_ref):
        col = col_ref[...]               # (1, Lo) int32: output lane % Wp
        valid = col < W                  # non-junk output lanes
        is_c0 = col == 0                 # output column 0
        is_cw1 = col == (W - 1)          # output column W-1

        def conv3x3(row_taps, w_ref):
            # 9 accumulating MXU matmuls into the f32 scratch accumulator
            # (ref accumulation -> MRB-friendly on v7x; no bias broadcast).
            for kh in range(3):
                taps = row_taps(kh)
                for kw in range(3):
                    d = jnp.dot(w_ref[kh * 3 + kw], taps[kw],
                                preferred_element_type=jnp.float32)
                    if kh == 0 and kw == 0:
                        acc_ref[...] = d
                    else:
                        acc_ref[...] += d
            return acc_ref[...]

        def inst_norm_relu(y):
            # One-pass masked InstanceNorm (f32, biased variance clamped at 0)
            # followed by ReLU; junk lanes are excluded from the statistics.
            ym = jnp.where(valid, y, 0.0)
            mean = jnp.sum(ym, axis=1, keepdims=True) * inv_hw
            var = jnp.sum(ym * ym, axis=1, keepdims=True) * inv_hw - mean * mean
            var = jnp.maximum(var, 0.0)
            return jnp.maximum((y - mean) * lax.rsqrt(var + EPS), 0.0)

        # ---------------- layer 1: conv -> IN -> ReLU ----------------
        xpv = xp_ref[0]                               # (C, LE) fully reflect-padded x

        def taps1(kh):
            b = kh * Wp
            return tuple(xpv[:, b + kw:b + kw + Lo] for kw in range(3))

        h1 = inst_norm_relu(conv3x3(taps1, w1_ref)).astype(compute_dtype)

        # ---- rebuild only the VERTICAL reflection of h1 in VMEM ----
        # (row stride stays Wp; the horizontal reflection is folded into the
        #  layer-2 tap operands below, so border columns may hold junk.)
        pad_ref[:, Wp + 1:Wp + 1 + Lo] = h1                               # interior
        pad_ref[:, 1:1 + W] = h1[:, Wp:Wp + W]                            # top    <- row 1
        pad_ref[:, (H + 1) * Wp + 1:(H + 1) * Wp + 1 + W] = (
            h1[:, (H - 2) * Wp:(H - 2) * Wp + W])                         # bottom <- row H-2
        # Zero the handful of lanes no store ever reaches (they feed only the
        # junk output columns, but keep them finite).
        pad_ref[:, 0:1] = jnp.zeros((C, 1), compute_dtype)
        pad_ref[:, W + 1:W + 3] = jnp.zeros((C, 2), compute_dtype)
        pad_ref[:, Lp - 1:LE] = jnp.zeros((C, 3), compute_dtype)

        # ------------- layer 2: conv -> IN -> ReLU -> + x -------------
        h1p = pad_ref[...]

        def taps2(kh):
            b = kh * Wp
            r0 = h1p[:, b:b + Lo]
            r1 = h1p[:, b + 1:b + 1 + Lo]
            r2 = h1p[:, b + 2:b + 2 + Lo]
            # Horizontal reflection: at output col 0 the kw=0 tap must read
            # orig col 1 (== the kw=2 operand); at output col W-1 the kw=2 tap
            # must read orig col W-2 (== the kw=0 operand).
            return (jnp.where(is_c0, r2, r0), r1, jnp.where(is_cw1, r0, r2))

        y2 = inst_norm_relu(conv3x3(taps2, w2_ref))
        # Skip connection, taken from the resident padded input.
        # (in bf16 mode the skip is bf16-rounded; use compute_dtype=float32 for
        #  a bit-faithful residual path.)
        res = xpv[:, Wp + 1:Wp + 1 + Lo].astype(jnp.float32)
        o_ref[0] = (y2 + res).astype(o_ref.dtype)

    return kernel


def _vmem_limit_bytes(est_bytes):
    """Generation-aware scoped-VMEM limit (None -> compiler default)."""
    if est_bytes <= 12 * 1024 * 1024:
        return None
    cap = 64 * 1024 * 1024            # conservative fallback (v7x physical VMEM)
    try:
        cap = int(pltpu.get_tpu_info().vmem_capacity_bytes)
    except Exception:
        pass
    return min(max(2 * est_bytes, 32 * 1024 * 1024), (cap // 8) * 7)


def residual_block(x, w1, b1, b2_unused_marker=None, *args, **kwargs):
    raise NotImplementedError  # placeholder to avoid accidental misuse


def residual_block(x, w1, b1, w2, b2, *, compute_dtype=jnp.bfloat16):
    """ResidualBlock.forward: ReLU(IN(conv(ReLU(IN(conv(x)))))) + x, fused.

    b1/b2 are accepted for interface parity but never reach the kernel: a
    uniform per-channel bias is exactly cancelled by InstanceNorm's mean
    subtraction (affine=False), so dropping it only changes rounding.
    """
    del b1, b2
    N, C, H, W = x.shape
    Wp = W + 2
    Lo = H * Wp
    Lp = (H + 2) * Wp
    LE = Lp + 2
    cdt = jnp.dtype(compute_dtype)

    # Reflection-pad once in XLA (cheap: one fused pad+cast pass) and flatten
    # the spatial dims; 2 extra zero lanes keep every tap slice in-bounds.
    xp = jnp.pad(x, ((0, 0), (0, 0), (1, 1), (1, 1)), mode="reflect")
    xp = jnp.pad(xp.reshape(N, C, Lp), ((0, 0), (0, 0), (0, 2))).astype(cdt)

    col = (jnp.arange(Lo, dtype=jnp.int32) % Wp).reshape(1, Lo)
    w1_t = jnp.transpose(w1, (2, 3, 0, 1)).reshape(9, C, C).astype(cdt)
    w2_t = jnp.transpose(w2, (2, 3, 0, 1)).reshape(9, C, C).astype(cdt)

    kernel = _make_kernel(C, H, W, cdt)

    # VMEM budget estimate (double buffers + scratch + in-kernel temporaries).
    isz = cdt.itemsize
    osz = jnp.dtype(x.dtype).itemsize
    est = (2 * C * LE * isz          # double-buffered padded input
           + 2 * C * Lo * osz        # double-buffered output
           + C * LE * isz            # vertical-pad scratch
           + C * Lo * 4              # f32 conv accumulator scratch
           + 4 * C * Lo * 4          # f32 temporaries (IN stats / normalize / skip)
           + 3 * C * Lo * isz        # compute-dtype temporaries (h1, fixed taps)
           + 4 * 9 * C * C * isz     # both layers' tap weights
           + 2 * Lo * 4)             # column table
    vmem_limit = _vmem_limit_bytes(est)

    out_pw = pl.pallas_call(
        kernel,
        out_shape=jax.ShapeDtypeStruct((N, C, Lo), x.dtype),
        grid=(N,),
        in_specs=[
            pl.BlockSpec((1, Lo), lambda n: (0, 0)),         # lane % Wp table
            pl.BlockSpec((1, C, LE), lambda n: (n, 0, 0)),   # padded activation
            pl.BlockSpec((9, C, C), lambda n: (0, 0, 0)),    # layer-1 tap weights
            pl.BlockSpec((9, C, C), lambda n: (0, 0, 0)),    # layer-2 tap weights
        ],
        out_specs=pl.BlockSpec((1, C, Lo), lambda n: (n, 0, 0)),
        scratch_shapes=[
            pltpu.VMEM((C, LE), cdt),          # vertically-reflected h1
            pltpu.VMEM((C, Lo), jnp.float32),  # conv accumulator
        ],
        compiler_params=pltpu.CompilerParams(
            dimension_semantics=("parallel",),
            vmem_limit_bytes=vmem_limit,
        ),
    )(col, xp, w1_t, w2_t)

    # Drop the 2 junk lanes per row carried by the padded-width layout.
    # TODO(synk): skip this pass when chaining blocks in padded-width layout.
    return out_pw.reshape(N, C, H, Wp)[:, :, :, :W]


# ---------------------------------------------------------------------------
# Pure-JAX reference (for correctness check)
# ---------------------------------------------------------------------------
def _ref_conv_layer(x, w, b):
    xp = jnp.pad(x, ((0, 0), (0, 0), (1, 1), (1, 1)), mode="reflect")
    y = lax.conv_general_dilated(
        xp, w, (1, 1), "VALID", dimension_numbers=("NCHW", "OIHW", "NCHW"))
    y = y + b.reshape(1, -1, 1, 1)
    mean = y.mean(axis=(2, 3), keepdims=True)
    var = ((y - mean) ** 2).mean(axis=(2, 3), keepdims=True)
    y = (y - mean) / jnp.sqrt(var + EPS)
    return jnp.maximum(y, 0.0)


def residual_block_ref(x, w1, b1, w2, b2):
    return _ref_conv_layer(_ref_conv_layer(x, w1, b1), w2, b2) + x


# ---------------------------------------------------------------------------
if __name__ == "__main__":
    N, C, H, W = 2, 4, 16, 16
    key = jax.random.PRNGKey(0)
    kx, kw1, kb1, kw2, kb2 = jax.random.split(key, 5)

    # Deterministic synthetic parameters (shapes match nn.Conv2d(C, C, 3, 1)).
    fan_in = C * 3 * 3
    scale = 1.0 / jnp.sqrt(jnp.float32(fan_in))
    x = jax.random.normal(kx, (N, C, H, W), dtype=jnp.float32)
    w1 = jax.random.uniform(kw1, (C, C, 3, 3), jnp.float32, -scale, scale)
    b1 = jax.random.uniform(kb1, (C,), jnp.float32, -scale, scale)
    w2 = jax.random.uniform(kw2, (C, C, 3, 3), jnp.float32, -scale, scale)
    b2 = jax.random.uniform(kb2, (C,), jnp.float32, -scale, scale)

    ref = jax.block_until_ready(residual_block_ref(x, w1, b1, w2, b2))

    # f32 compute path: strict check against the XLA reference.
    out_f32 = jax.block_until_ready(
        residual_block(x, w1, b1, w2, b2, compute_dtype=jnp.float32))
    assert out_f32.shape == (N, C, H, W)
    err_f32 = float(jnp.max(jnp.abs(out_f32 - ref)))
    assert err_f32 < 5e-4, err_f32

    # bf16 MXU path (default, recommended on v6e/v7x): loose sanity check.
    out_bf16 = jax.block_until_ready(residual_block(x, w1, b1, w2, b2))
    assert out_bf16.shape == (N, C, H, W)
    assert bool(jnp.isfinite(out_bf16).all())
    assert float(jnp.max(jnp.abs(out_bf16 - ref))) < 0.5

    print("KERNEL_OK")
</pallas_src>

<mosaic_0001>
module attributes {stable_mosaic.version = 11 : i64} {
  func.func @kernel(%arg0: i32, %arg1: memref<1x288xi32, #tpu.memory_space<vmem>>, %arg2: memref<1x4x326xf32, #tpu.memory_space<vmem>>, %arg3: memref<9x4x4xf32, #tpu.memory_space<vmem>>, %arg4: memref<9x4x4xf32, #tpu.memory_space<vmem>>, %arg5: memref<1x4x288xf32, #tpu.memory_space<vmem>>, %arg6: memref<4x326xf32, #tpu.memory_space<vmem>>, %arg7: memref<4x288xf32, #tpu.memory_space<vmem>>) attributes {dimension_semantics = [#tpu.dimension_semantics<parallel>], iteration_bounds = array<i64: 2>, scalar_prefetch = 0 : i64, scratch_operands = 2 : i64, tpu.core_type = #tpu.core_type<tc>, window_params = [{pipeline_mode = #tpu.pipeline_mode<synchronous>, transform_indices = @transform_0, window_bounds = array<i64: 1, 288>}, {transform_indices = @transform_1, window_bounds = array<i64: 1, 4, 326>}, {pipeline_mode = #tpu.pipeline_mode<synchronous>, transform_indices = @transform_2, window_bounds = array<i64: 9, 4, 4>}, {pipeline_mode = #tpu.pipeline_mode<synchronous>, transform_indices = @transform_3, window_bounds = array<i64: 9, 4, 4>}, {transform_indices = @transform_4, window_bounds = array<i64: 1, 4, 288>}]} {
    %c0 = arith.constant 0 : index
    %c0_0 = arith.constant 0 : index
    %0 = vector.load %arg1[%c0, %c0_0] : memref<1x288xi32, #tpu.memory_space<vmem>>, vector<1x288xi32>
    %c16_i32 = arith.constant 16 : i32
    %1 = vector.broadcast %c16_i32 : i32 to vector<1x288xi32>
    %2 = arith.cmpi slt, %0, %1 : vector<1x288xi32>
    %c0_i32 = arith.constant 0 : i32
    %3 = vector.broadcast %c0_i32 : i32 to vector<1x288xi32>
    %4 = arith.cmpi eq, %0, %3 : vector<1x288xi32>
    %c15_i32 = arith.constant 15 : i32
    %5 = vector.broadcast %c15_i32 : i32 to vector<1x288xi32>
    %6 = arith.cmpi eq, %0, %5 : vector<1x288xi32>
    %c0_1 = arith.constant 0 : index
    %c0_2 = arith.constant 0 : index
    %c0_3 = arith.constant 0 : index
    %7 = vector.load %arg2[%c0_1, %c0_2, %c0_3] : memref<1x4x326xf32, #tpu.memory_space<vmem>>, vector<1x4x326xf32>
    %8 = vector.shape_cast %7 : vector<1x4x326xf32> to vector<4x326xf32>
    %9 = vector.extract_strided_slice %8 {offsets = [0, 0], sizes = [4, 288], strides = [1, 1]} : vector<4x326xf32> to vector<4x288xf32>
    %10 = vector.extract_strided_slice %8 {offsets = [0, 1], sizes = [4, 288], strides = [1, 1]} : vector<4x326xf32> to vector<4x288xf32>
    %11 = vector.extract_strided_slice %8 {offsets = [0, 2], sizes = [4, 288], strides = [1, 1]} : vector<4x326xf32> to vector<4x288xf32>
    %c0_4 = arith.constant 0 : index
    %c0_5 = arith.constant 0 : index
    %c0_6 = arith.constant 0 : index
    %12 = vector.load %arg3[%c0_4, %c0_5, %c0_6] : memref<9x4x4xf32, #tpu.memory_space<vmem>>, vector<1x4x4xf32>
    %13 = vector.shape_cast %12 : vector<1x4x4xf32> to vector<4x4xf32>
    %cst = arith.constant dense<0.000000e+00> : vector<4x288xf32>
    %14 = tpu.matmul %13, %9, %cst {dimension_numbers = #tpu.dot_dimension_numbers<[1], [0], [0], [1], [0, 0, 1, 1], [], []>} : vector<4x4xf32>, vector<4x288xf32>, vector<4x288xf32> -> vector<4x288xf32>
    %c0_7 = arith.constant 0 : index
    %c0_8 = arith.constant 0 : index
    %15 = vector.load %arg7[%c0_7, %c0_8] : memref<4x288xf32, #tpu.memory_space<vmem>>, vector<4x288xf32>
    tpu.vector_store %arg7[%c0_7, %c0_8], %14 {strides = array<i32>} : memref<4x288xf32, #tpu.memory_space<vmem>>, vector<4x288xf32>,
    %c1 = arith.constant 1 : index
    %c0_9 = arith.constant 0 : index
    %c0_10 = arith.constant 0 : index
    %16 = vector.load %arg3[%c1, %c0_9, %c0_10] : memref<9x4x4xf32, #tpu.memory_space<vmem>>, vector<1x4x4xf32>
    %17 = vector.shape_cast %16 : vector<1x4x4xf32> to vector<4x4xf32>
    %cst_11 = arith.constant dense<0.000000e+00> : vector<4x288xf32>
    %18 = tpu.matmul %17, %10, %cst_11 {dimension_numbers = #tpu.dot_dimension_numbers<[1], [0], [0], [1], [0, 0, 1, 1], [], []>} : vector<4x4xf32>, vector<4x288xf32>, vector<4x288xf32> -> vector<4x288xf32>
    %c0_12 = arith.constant 0 : index
    %c0_13 = arith.constant 0 : index
    %19 = vector.load %arg7[%c0_12, %c0_13] : memref<4x288xf32, #tpu.memory_space<vmem>>, vector<4x288xf32>
    %20 = arith.addf %19, %18 : vector<4x288xf32>
    %c0_14 = arith.constant 0 : index
    %c0_15 = arith.constant 0 : index
    %21 = vector.load %arg7[%c0_14, %c0_15] : memref<4x288xf32, #tpu.memory_space<vmem>>, vector<4x288xf32>
    tpu.vector_store %arg7[%c0_14, %c0_15], %20 {strides = array<i32>} : memref<4x288xf32, #tpu.memory_space<vmem>>, vector<4x288xf32>,
    %c2 = arith.constant 2 : index
    %c0_16 = arith.constant 0 : index
    %c0_17 = arith.constant 0 : index
    %22 = vector.load %arg3[%c2, %c0_16, %c0_17] : memref<9x4x4xf32, #tpu.memory_space<vmem>>, vector<1x4x4xf32>
    %23 = vector.shape_cast %22 : vector<1x4x4xf32> to vector<4x4xf32>
    %cst_18 = arith.constant dense<0.000000e+00> : vector<4x288xf32>
    %24 = tpu.matmul %23, %11, %cst_18 {dimension_numbers = #tpu.dot_dimension_numbers<[1], [0], [0], [1], [0, 0, 1, 1], [], []>} : vector<4x4xf32>, vector<4x288xf32>, vector<4x288xf32> -> vector<4x288xf32>
    %c0_19 = arith.constant 0 : index
    %c0_20 = arith.constant 0 : index
    %25 = vector.load %arg7[%c0_19, %c0_20] : memref<4x288xf32, #tpu.memory_space<vmem>>, vector<4x288xf32>
    %26 = arith.addf %25, %24 : vector<4x288xf32>
    %c0_21 = arith.constant 0 : index
    %c0_22 = arith.constant 0 : index
    %27 = vector.load %arg7[%c0_21, %c0_22] : memref<4x288xf32, #tpu.memory_space<vmem>>, vector<4x288xf32>
    tpu.vector_store %arg7[%c0_21, %c0_22], %26 {strides = array<i32>} : memref<4x288xf32, #tpu.memory_space<vmem>>, vector<4x288xf32>,
    %28 = vector.extract_strided_slice %8 {offsets = [0, 18], sizes = [4, 288], strides = [1, 1]} : vector<4x326xf32> to vector<4x288xf32>
    %29 = vector.extract_strided_slice %8 {offsets = [0, 19], sizes = [4, 288], strides = [1, 1]} : vector<4x326xf32> to vector<4x288xf32>
    %30 = vector.extract_strided_slice %8 {offsets = [0, 20], sizes = [4, 288], strides = [1, 1]} : vector<4x326xf32> to vector<4x288xf32>
    %c3 = arith.constant 3 : index
    %c0_23 = arith.constant 0 : index
    %c0_24 = arith.constant 0 : index
    %31 = vector.load %arg3[%c3, %c0_23, %c0_24] : memref<9x4x4xf32, #tpu.memory_space<vmem>>, vector<1x4x4xf32>
    %32 = vector.shape_cast %31 : vector<1x4x4xf32> to vector<4x4xf32>
    %cst_25 = arith.constant dense<0.000000e+00> : vector<4x288xf32>
    %33 = tpu.matmul %32, %28, %cst_25 {dimension_numbers = #tpu.dot_dimension_numbers<[1], [0], [0], [1], [0, 0, 1, 1], [], []>} : vector<4x4xf32>, vector<4x288xf32>, vector<4x288xf32> -> vector<4x288xf32>
    %c0_26 = arith.constant 0 : index
    %c0_27 = arith.constant 0 : index
    %34 = vector.load %arg7[%c0_26, %c0_27] : memref<4x288xf32, #tpu.memory_space<vmem>>, vector<4x288xf32>
    %35 = arith.addf %34, %33 : vector<4x288xf32>
    %c0_28 = arith.constant 0 : index
    %c0_29 = arith.constant 0 : index
    %36 = vector.load %arg7[%c0_28, %c0_29] : memref<4x288xf32, #tpu.memory_space<vmem>>, vector<4x288xf32>
    tpu.vector_store %arg7[%c0_28, %c0_29], %35 {strides = array<i32>} : memref<4x288xf32, #tpu.memory_space<vmem>>, vector<4x288xf32>,
    %c4 = arith.constant 4 : index
    %c0_30 = arith.constant 0 : index
    %c0_31 = arith.constant 0 : index
    %37 = vector.load %arg3[%c4, %c0_30, %c0_31] : memref<9x4x4xf32, #tpu.memory_space<vmem>>, vector<1x4x4xf32>
    %38 = vector.shape_cast %37 : vector<1x4x4xf32> to vector<4x4xf32>
    %cst_32 = arith.constant dense<0.000000e+00> : vector<4x288xf32>
    %39 = tpu.matmul %38, %29, %cst_32 {dimension_numbers = #tpu.dot_dimension_numbers<[1], [0], [0], [1], [0, 0, 1, 1], [], []>} : vector<4x4xf32>, vector<4x288xf32>, vector<4x288xf32> -> vector<4x288xf32>
    %c0_33 = arith.constant 0 : index
    %c0_34 = arith.constant 0 : index
    %40 = vector.load %arg7[%c0_33, %c0_34] : memref<4x288xf32, #tpu.memory_space<vmem>>, vector<4x288xf32>
    %41 = arith.addf %40, %39 : vector<4x288xf32>
    %c0_35 = arith.constant 0 : index
    %c0_36 = arith.constant 0 : index
    %42 = vector.load %arg7[%c0_35, %c0_36] : memref<4x288xf32, #tpu.memory_space<vmem>>, vector<4x288xf32>
    tpu.vector_store %arg7[%c0_35, %c0_36], %41 {strides = array<i32>} : memref<4x288xf32, #tpu.memory_space<vmem>>, vector<4x288xf32>,
    %c5 = arith.constant 5 : index
    %c0_37 = arith.constant 0 : index
    %c0_38 = arith.constant 0 : index
    %43 = vector.load %arg3[%c5, %c0_37, %c0_38] : memref<9x4x4xf32, #tpu.memory_space<vmem>>, vector<1x4x4xf32>
    %44 = vector.shape_cast %43 : vector<1x4x4xf32> to vector<4x4xf32>
    %cst_39 = arith.constant dense<0.000000e+00> : vector<4x288xf32>
    %45 = tpu.matmul %44, %30, %cst_39 {dimension_numbers = #tpu.dot_dimension_numbers<[1], [0], [0], [1], [0, 0, 1, 1], [], []>} : vector<4x4xf32>, vector<4x288xf32>, vector<4x288xf32> -> vector<4x288xf32>
    %c0_40 = arith.constant 0 : index
    %c0_41 = arith.constant 0 : index
    %46 = vector.load %arg7[%c0_40, %c0_41] : memref<4x288xf32, #tpu.memory_space<vmem>>, vector<4x288xf32>
    %47 = arith.addf %46, %45 : vector<4x288xf32>
    %c0_42 = arith.constant 0 : index
    %c0_43 = arith.constant 0 : index
    %48 = vector.load %arg7[%c0_42, %c0_43] : memref<4x288xf32, #tpu.memory_space<vmem>>, vector<4x288xf32>
    tpu.vector_store %arg7[%c0_42, %c0_43], %47 {strides = array<i32>} : memref<4x288xf32, #tpu.memory_space<vmem>>, vector<4x288xf32>,
    %49 = vector.extract_strided_slice %8 {offsets = [0, 36], sizes = [4, 288], strides = [1, 1]} : vector<4x326xf32> to vector<4x288xf32>
    %50 = vector.extract_strided_slice %8 {offsets = [0, 37], sizes = [4, 288], strides = [1, 1]} : vector<4x326xf32> to vector<4x288xf32>
    %51 = vector.extract_strided_slice %8 {offsets = [0, 38], sizes = [4, 288], strides = [1, 1]} : vector<4x326xf32> to vector<4x288xf32>
    %c6 = arith.constant 6 : index
    %c0_44 = arith.constant 0 : index
    %c0_45 = arith.constant 0 : index
    %52 = vector.load %arg3[%c6, %c0_44, %c0_45] : memref<9x4x4xf32, #tpu.memory_space<vmem>>, vector<1x4x4xf32>
    %53 = vector.shape_cast %52 : vector<1x4x4xf32> to vector<4x4xf32>
    %cst_46 = arith.constant dense<0.000000e+00> : vector<4x288xf32>
    %54 = tpu.matmul %53, %49, %cst_46 {dimension_numbers = #tpu.dot_dimension_numbers<[1], [0], [0], [1], [0, 0, 1, 1], [], []>} : vector<4x4xf32>, vector<4x288xf32>, vector<4x288xf32> -> vector<4x288xf32>
    %c0_47 = arith.constant 0 : index
    %c0_48 = arith.constant 0 : index
    %55 = vector.load %arg7[%c0_47, %c0_48] : memref<4x288xf32, #tpu.memory_space<vmem>>, vector<4x288xf32>
    %56 = arith.addf %55, %54 : vector<4x288xf32>
    %c0_49 = arith.constant 0 : index
    %c0_50 = arith.constant 0 : index
    %57 = vector.load %arg7[%c0_49, %c0_50] : memref<4x288xf32, #tpu.memory_space<vmem>>, vector<4x288xf32>
    tpu.vector_store %arg7[%c0_49, %c0_50], %56 {strides = array<i32>} : memref<4x288xf32, #tpu.memory_space<vmem>>, vector<4x288xf32>,
    %c7 = arith.constant 7 : index
    %c0_51 = arith.constant 0 : index
    %c0_52 = arith.constant 0 : index
    %58 = vector.load %arg3[%c7, %c0_51, %c0_52] : memref<9x4x4xf32, #tpu.memory_space<vmem>>, vector<1x4x4xf32>
    %59 = vector.shape_cast %58 : vector<1x4x4xf32> to vector<4x4xf32>
    %cst_53 = arith.constant dense<0.000000e+00> : vector<4x288xf32>
    %60 = tpu.matmul %59, %50, %cst_53 {dimension_numbers = #tpu.dot_dimension_numbers<[1], [0], [0], [1], [0, 0, 1, 1], [], []>} : vector<4x4xf32>, vector<4x288xf32>, vector<4x288xf32> -> vector<4x288xf32>
    %c0_54 = arith.constant 0 : index
    %c0_55 = arith.constant 0 : index
    %61 = vector.load %arg7[%c0_54, %c0_55] : memref<4x288xf32, #tpu.memory_space<vmem>>, vector<4x288xf32>
    %62 = arith.addf %61, %60 : vector<4x288xf32>
    %c0_56 = arith.constant 0 : index
    %c0_57 = arith.constant 0 : index
    %63 = vector.load %arg7[%c0_56, %c0_57] : memref<4x288xf32, #tpu.memory_space<vmem>>, vector<4x288xf32>
    tpu.vector_store %arg7[%c0_56, %c0_57], %62 {strides = array<i32>} : memref<4x288xf32, #tpu.memory_space<vmem>>, vector<4x288xf32>,
    %c8 = arith.constant 8 : index
    %c0_58 = arith.constant 0 : index
    %c0_59 = arith.constant 0 : index
    %64 = vector.load %arg3[%c8, %c0_58, %c0_59] : memref<9x4x4xf32, #tpu.memory_space<vmem>>, vector<1x4x4xf32>
    %65 = vector.shape_cast %64 : vector<1x4x4xf32> to vector<4x4xf32>
    %cst_60 = arith.constant dense<0.000000e+00> : vector<4x288xf32>
    %66 = tpu.matmul %65, %51, %cst_60 {dimension_numbers = #tpu.dot_dimension_numbers<[1], [0], [0], [1], [0, 0, 1, 1], [], []>} : vector<4x4xf32>, vector<4x288xf32>, vector<4x288xf32> -> vector<4x288xf32>
    %c0_61 = arith.constant 0 : index
    %c0_62 = arith.constant 0 : index
    %67 = vector.load %arg7[%c0_61, %c0_62] : memref<4x288xf32, #tpu.memory_space<vmem>>, vector<4x288xf32>
    %68 = arith.addf %67, %66 : vector<4x288xf32>
    %c0_63 = arith.constant 0 : index
    %c0_64 = arith.constant 0 : index
    %69 = vector.load %arg7[%c0_63, %c0_64] : memref<4x288xf32, #tpu.memory_space<vmem>>, vector<4x288xf32>
    tpu.vector_store %arg7[%c0_63, %c0_64], %68 {strides = array<i32>} : memref<4x288xf32, #tpu.memory_space<vmem>>, vector<4x288xf32>,
    %c0_65 = arith.constant 0 : index
    %c0_66 = arith.constant 0 : index
    %70 = vector.load %arg7[%c0_65, %c0_66] : memref<4x288xf32, #tpu.memory_space<vmem>>, vector<4x288xf32>
    %cst_67 = arith.constant 0.000000e+00 : f32
    %71 = vector.shape_cast %2 : vector<1x288xi1> to vector<1x288xi1>
    %72 = vector.broadcast %71 : vector<1x288xi1> to vector<4x288xi1>
    %73 = vector.broadcast %cst_67 : f32 to vector<4x288xf32>
    %74 = arith.select %72, %70, %73 : vector<4x288xi1>, vector<4x288xf32>
    %cst_68 = arith.constant dense<0.000000e+00> : vector<4xf32>
    %75 = vector.multi_reduction <add>, %74, %cst_68 [1] : vector<4x288xf32> to vector<4xf32>
    %76 = vector.shape_cast %75 : vector<4xf32> to vector<4x1xf32>
    %cst_69 = arith.constant 3.906250e-03 : f32
    %77 = vector.broadcast %cst_69 : f32 to vector<4x1xf32>
    %78 = arith.mulf %76, %77 : vector<4x1xf32>
    %79 = arith.mulf %74, %74 : vector<4x288xf32>
    %cst_70 = arith.constant dense<0.000000e+00> : vector<4xf32>
    %80 = vector.multi_reduction <add>, %79, %cst_70 [1] : vector<4x288xf32> to vector<4xf32>
    %81 = vector.shape_cast %80 : vector<4xf32> to vector<4x1xf32>
    %cst_71 = arith.constant 3.906250e-03 : f32
    %82 = vector.broadcast %cst_71 : f32 to vector<4x1xf32>
    %83 = arith.mulf %81, %82 : vector<4x1xf32>
    %84 = arith.mulf %78, %78 : vector<4x1xf32>
    %85 = arith.subf %83, %84 : vector<4x1xf32>
    %cst_72 = arith.constant 0.000000e+00 : f32
    %86 = vector.broadcast %cst_72 : f32 to vector<4x1xf32>
    %87 = arith.maximumf %85, %86 : vector<4x1xf32>
    %88 = vector.broadcast %78 : vector<4x1xf32> to vector<4x288xf32>
    %89 = arith.subf %70, %88 : vector<4x288xf32>
    %cst_73 = arith.constant 9.99999974E-6 : f32
    %90 = vector.broadcast %cst_73 : f32 to vector<4x1xf32>
    %91 = arith.addf %87, %90 : vector<4x1xf32>
    %92 = math.rsqrt %91 : vector<4x1xf32>
    %93 = vector.broadcast %92 : vector<4x1xf32> to vector<4x288xf32>
    %94 = arith.mulf %89, %93 : vector<4x288xf32>
    %cst_74 = arith.constant 0.000000e+00 : f32
    %95 = vector.broadcast %cst_74 : f32 to vector<4x288xf32>
    %96 = arith.maximumf %94, %95 : vector<4x288xf32>
    %c0_75 = arith.constant 0 : index
    %c19 = arith.constant 19 : index
    %97 = vector.load %arg6[%c0_75, %c19] : memref<4x326xf32, #tpu.memory_space<vmem>>, vector<4x288xf32>
    tpu.vector_store %arg6[%c0_75, %c19], %96 {strides = array<i32>} : memref<4x326xf32, #tpu.memory_space<vmem>>, vector<4x288xf32>,
    %98 = vector.extract_strided_slice %96 {offsets = [0, 18], sizes = [4, 16], strides = [1, 1]} : vector<4x288xf32> to vector<4x16xf32>
    %c0_76 = arith.constant 0 : index
    %c1_77 = arith.constant 1 : index
    %99 = vector.load %arg6[%c0_76, %c1_77] : memref<4x326xf32, #tpu.memory_space<vmem>>, vector<4x16xf32>
    tpu.vector_store %arg6[%c0_76, %c1_77], %98 {strides = array<i32>} : memref<4x326xf32, #tpu.memory_space<vmem>>, vector<4x16xf32>,
    %100 = vector.extract_strided_slice %96 {offsets = [0, 252], sizes = [4, 16], strides = [1, 1]} : vector<4x288xf32> to vector<4x16xf32>
    %c0_78 = arith.constant 0 : index
    %c307 = arith.constant 307 : index
    %101 = vector.load %arg6[%c0_78, %c307] : memref<4x326xf32, #tpu.memory_space<vmem>>, vector<4x16xf32>
    tpu.vector_store %arg6[%c0_78, %c307], %100 {strides = array<i32>} : memref<4x326xf32, #tpu.memory_space<vmem>>, vector<4x16xf32>,
    %cst_79 = arith.constant 0.000000e+00 : f32
    %102 = vector.broadcast %cst_79 : f32 to vector<4x1xf32>
    %c0_80 = arith.constant 0 : index
    %c0_81 = arith.constant 0 : index
    %103 = vector.load %arg6[%c0_80, %c0_81] : memref<4x326xf32, #tpu.memory_space<vmem>>, vector<4x1xf32>
    tpu.vector_store %arg6[%c0_80, %c0_81], %102 {strides = array<i32>} : memref<4x326xf32, #tpu.memory_space<vmem>>, vector<4x1xf32>,
    %cst_82 = arith.constant 0.000000e+00 : f32
    %104 = vector.broadcast %cst_82 : f32 to vector<4x2xf32>
    %c0_83 = arith.constant 0 : index
    %c17 = arith.constant 17 : index
    %105 = vector.load %arg6[%c0_83, %c17] : memref<4x326xf32, #tpu.memory_space<vmem>>, vector<4x2xf32>
    tpu.vector_store %arg6[%c0_83, %c17], %104 {strides = array<i32>} : memref<4x326xf32, #tpu.memory_space<vmem>>, vector<4x2xf32>,
    %cst_84 = arith.constant 0.000000e+00 : f32
    %106 = vector.broadcast %cst_84 : f32 to vector<4x3xf32>
    %c0_85 = arith.constant 0 : index
    %c323 = arith.constant 323 : index
    %107 = vector.load %arg6[%c0_85, %c323] : memref<4x326xf32, #tpu.memory_space<vmem>>, vector<4x3xf32>
    tpu.vector_store %arg6[%c0_85, %c323], %106 {strides = array<i32>} : memref<4x326xf32, #tpu.memory_space<vmem>>, vector<4x3xf32>,
    %c0_86 = arith.constant 0 : index
    %c0_87 = arith.constant 0 : index
    %108 = vector.load %arg6[%c0_86, %c0_87] : memref<4x326xf32, #tpu.memory_space<vmem>>, vector<4x326xf32>
    %109 = vector.extract_strided_slice %108 {offsets = [0, 0], sizes = [4, 288], strides = [1, 1]} : vector<4x326xf32> to vector<4x288xf32>
    %110 = vector.extract_strided_slice %108 {offsets = [0, 1], sizes = [4, 288], strides = [1, 1]} : vector<4x326xf32> to vector<4x288xf32>
    %111 = vector.extract_strided_slice %108 {offsets = [0, 2], sizes = [4, 288], strides = [1, 1]} : vector<4x326xf32> to vector<4x288xf32>
    %112 = vector.shape_cast %4 : vector<1x288xi1> to vector<1x288xi1>
    %113 = vector.broadcast %112 : vector<1x288xi1> to vector<4x288xi1>
    %114 = arith.select %113, %111, %109 : vector<4x288xi1>, vector<4x288xf32>
    %115 = vector.shape_cast %6 : vector<1x288xi1> to vector<1x288xi1>
    %116 = vector.broadcast %115 : vector<1x288xi1> to vector<4x288xi1>
    %117 = arith.select %116, %109, %111 : vector<4x288xi1>, vector<4x288xf32>
    %c0_88 = arith.constant 0 : index
    %c0_89 = arith.constant 0 : index
    %c0_90 = arith.constant 0 : index
    %118 = vector.load %arg4[%c0_88, %c0_89, %c0_90] : memref<9x4x4xf32, #tpu.memory_space<vmem>>, vector<1x4x4xf32>
    %119 = vector.shape_cast %118 : vector<1x4x4xf32> to vector<4x4xf32>
    %cst_91 = arith.constant dense<0.000000e+00> : vector<4x288xf32>
    %120 = tpu.matmul %119, %114, %cst_91 {dimension_numbers = #tpu.dot_dimension_numbers<[1], [0], [0], [1], [0, 0, 1, 1], [], []>} : vector<4x4xf32>, vector<4x288xf32>, vector<4x288xf32> -> vector<4x288xf32>
    %c0_92 = arith.constant 0 : index
    %c0_93 = arith.constant 0 : index
    %121 = vector.load %arg7[%c0_92, %c0_93] : memref<4x288xf32, #tpu.memory_space<vmem>>, vector<4x288xf32>
    tpu.vector_store %arg7[%c0_92, %c0_93], %120 {strides = array<i32>} : memref<4x288xf32, #tpu.memory_space<vmem>>, vector<4x288xf32>,
    %c1_94 = arith.constant 1 : index
    %c0_95 = arith.constant 0 : index
    %c0_96 = arith.constant 0 : index
    %122 = vector.load %arg4[%c1_94, %c0_95, %c0_96] : memref<9x4x4xf32, #tpu.memory_space<vmem>>, vector<1x4x4xf32>
    %123 = vector.shape_cast %122 : vector<1x4x4xf32> to vector<4x4xf32>
    %cst_97 = arith.constant dense<0.000000e+00> : vector<4x288xf32>
    %124 = tpu.matmul %123, %110, %cst_97 {dimension_numbers = #tpu.dot_dimension_numbers<[1], [0], [0], [1], [0, 0, 1, 1], [], []>} : vector<4x4xf32>, vector<4x288xf32>, vector<4x288xf32> -> vector<4x288xf32>
    %c0_98 = arith.constant 0 : index
    %c0_99 = arith.constant 0 : index
    %125 = vector.load %arg7[%c0_98, %c0_99] : memref<4x288xf32, #tpu.memory_space<vmem>>, vector<4x288xf32>
    %126 = arith.addf %125, %124 : vector<4x288xf32>
    %c0_100 = arith.constant 0 : index
    %c0_101 = arith.constant 0 : index
    %127 = vector.load %arg7[%c0_100, %c0_101] : memref<4x288xf32, #tpu.memory_space<vmem>>, vector<4x288xf32>
    tpu.vector_store %arg7[%c0_100, %c0_101], %126 {strides = array<i32>} : memref<4x288xf32, #tpu.memory_space<vmem>>, vector<4x288xf32>,
    %c2_102 = arith.constant 2 : index
    %c0_103 = arith.constant 0 : index
    %c0_104 = arith.constant 0 : index
    %128 = vector.load %arg4[%c2_102, %c0_103, %c0_104] : memref<9x4x4xf32, #tpu.memory_space<vmem>>, vector<1x4x4xf32>
    %129 = vector.shape_cast %128 : vector<1x4x4xf32> to vector<4x4xf32>
    %cst_105 = arith.constant dense<0.000000e+00> : vector<4x288xf32>
    %130 = tpu.matmul %129, %117, %cst_105 {dimension_numbers = #tpu.dot_dimension_numbers<[1], [0], [0], [1], [0, 0, 1, 1], [], []>} : vector<4x4xf32>, vector<4x288xf32>, vector<4x288xf32> -> vector<4x288xf32>
    %c0_106 = arith.constant 0 : index
    %c0_107 = arith.constant 0 : index
    %131 = vector.load %arg7[%c0_106, %c0_107] : memref<4x288xf32, #tpu.memory_space<vmem>>, vector<4x288xf32>
    %132 = arith.addf %131, %130 : vector<4x288xf32>
    %c0_108 = arith.constant 0 : index
    %c0_109 = arith.constant 0 : index
    %133 = vector.load %arg7[%c0_108, %c0_109] : memref<4x288xf32, #tpu.memory_space<vmem>>, vector<4x288xf32>
    tpu.vector_store %arg7[%c0_108, %c0_109], %132 {strides = array<i32>} : memref<4x288xf32, #tpu.memory_space<vmem>>, vector<4x288xf32>,
    %134 = vector.extract_strided_slice %108 {offsets = [0, 18], sizes = [4, 288], strides = [1, 1]} : vector<4x326xf32> to vector<4x288xf32>
    %135 = vector.extract_strided_slice %108 {offsets = [0, 19], sizes = [4, 288], strides = [1, 1]} : vector<4x326xf32> to vector<4x288xf32>
    %136 = vector.extract_strided_slice %108 {offsets = [0, 20], sizes = [4, 288], strides = [1, 1]} : vector<4x326xf32> to vector<4x288xf32>
    %137 = vector.shape_cast %4 : vector<1x288xi1> to vector<1x288xi1>
    %138 = vector.broadcast %137 : vector<1x288xi1> to vector<4x288xi1>
    %139 = arith.select %138, %136, %134 : vector<4x288xi1>, vector<4x288xf32>
    %140 = vector.shape_cast %6 : vector<1x288xi1> to vector<1x288xi1>
    %141 = vector.broadcast %140 : vector<1x288xi1> to vector<4x288xi1>
    %142 = arith.select %141, %134, %136 : vector<4x288xi1>, vector<4x288xf32>
    %c3_110 = arith.constant 3 : index
    %c0_111 = arith.constant 0 : index
    %c0_112 = arith.constant 0 : index
    %143 = vector.load %arg4[%c3_110, %c0_111, %c0_112] : memref<9x4x4xf32, #tpu.memory_space<vmem>>, vector<1x4x4xf32>
    %144 = vector.shape_cast %143 : vector<1x4x4xf32> to vector<4x4xf32>
    %cst_113 = arith.constant dense<0.000000e+00> : vector<4x288xf32>
    %145 = tpu.matmul %144, %139, %cst_113 {dimension_numbers = #tpu.dot_dimension_numbers<[1], [0], [0], [1], [0, 0, 1, 1], [], []>} : vector<4x4xf32>, vector<4x288xf32>, vector<4x288xf32> -> vector<4x288xf32>
    %c0_114 = arith.constant 0 : index
    %c0_115 = arith.constant 0 : index
    %146 = vector.load %arg7[%c0_114, %c0_115] : memref<4x288xf32, #tpu.memory_space<vmem>>, vector<4x288xf32>
    %147 = arith.addf %146, %145 : vector<4x288xf32>
    %c0_116 = arith.constant 0 : index
    %c0_117 = arith.constant 0 : index
    %148 = vector.load %arg7[%c0_116, %c0_117] : memref<4x288xf32, #tpu.memory_space<vmem>>, vector<4x288xf32>
    tpu.vector_store %arg7[%c0_116, %c0_117], %147 {strides = array<i32>} : memref<4x288xf32, #tpu.memory_space<vmem>>, vector<4x288xf32>,
    %c4_118 = arith.constant 4 : index
    %c0_119 = arith.constant 0 : index
    %c0_120 = arith.constant 0 : index
    %149 = vector.load %arg4[%c4_118, %c0_119, %c0_120] : memref<9x4x4xf32, #tpu.memory_space<vmem>>, vector<1x4x4xf32>
    %150 = vector.shape_cast %149 : vector<1x4x4xf32> to vector<4x4xf32>
    %cst_121 = arith.constant dense<0.000000e+00> : vector<4x288xf32>
    %151 = tpu.matmul %150, %135, %cst_121 {dimension_numbers = #tpu.dot_dimension_numbers<[1], [0], [0], [1], [0, 0, 1, 1], [], []>} : vector<4x4xf32>, vector<4x288xf32>, vector<4x288xf32> -> vector<4x288xf32>
    %c0_122 = arith.constant 0 : index
    %c0_123 = arith.constant 0 : index
    %152 = vector.load %arg7[%c0_122, %c0_123] : memref<4x288xf32, #tpu.memory_space<vmem>>, vector<4x288xf32>
    %153 = arith.addf %152, %151 : vector<4x288xf32>
    %c0_124 = arith.constant 0 : index
    %c0_125 = arith.constant 0 : index
    %154 = vector.load %arg7[%c0_124, %c0_125] : memref<4x288xf32, #tpu.memory_space<vmem>>, vector<4x288xf32>
    tpu.vector_store %arg7[%c0_124, %c0_125], %153 {strides = array<i32>} : memref<4x288xf32, #tpu.memory_space<vmem>>, vector<4x288xf32>,
    %c5_126 = arith.constant 5 : index
    %c0_127 = arith.constant 0 : index
    %c0_128 = arith.constant 0 : index
    %155 = vector.load %arg4[%c5_126, %c0_127, %c0_128] : memref<9x4x4xf32, #tpu.memory_space<vmem>>, vector<1x4x4xf32>
    %156 = vector.shape_cast %155 : vector<1x4x4xf32> to vector<4x4xf32>
    %cst_129 = arith.constant dense<0.000000e+00> : vector<4x288xf32>
    %157 = tpu.matmul %156, %142, %cst_129 {dimension_numbers = #tpu.dot_dimension_numbers<[1], [0], [0], [1], [0, 0, 1, 1], [], []>} : vector<4x4xf32>, vector<4x288xf32>, vector<4x288xf32> -> vector<4x288xf32>
    %c0_130 = arith.constant 0 : index
    %c0_131 = arith.constant 0 : index
    %158 = vector.load %arg7[%c0_130, %c0_131] : memref<4x288xf32, #tpu.memory_space<vmem>>, vector<4x288xf32>
    %159 = arith.addf %158, %157 : vector<4x288xf32>
    %c0_132 = arith.constant 0 : index
    %c0_133 = arith.constant 0 : index
    %160 = vector.load %arg7[%c0_132, %c0_133] : memref<4x288xf32, #tpu.memory_space<vmem>>, vector<4x288xf32>
    tpu.vector_store %arg7[%c0_132, %c0_133], %159 {strides = array<i32>} : memref<4x288xf32, #tpu.memory_space<vmem>>, vector<4x288xf32>,
    %161 = vector.extract_strided_slice %108 {offsets = [0, 36], sizes = [4, 288], strides = [1, 1]} : vector<4x326xf32> to vector<4x288xf32>
    %162 = vector.extract_strided_slice %108 {offsets = [0, 37], sizes = [4, 288], strides = [1, 1]} : vector<4x326xf32> to vector<4x288xf32>
    %163 = vector.extract_strided_slice %108 {offsets = [0, 38], sizes = [4, 288], strides = [1, 1]} : vector<4x326xf32> to vector<4x288xf32>
    %164 = vector.shape_cast %4 : vector<1x288xi1> to vector<1x288xi1>
    %165 = vector.broadcast %164 : vector<1x288xi1> to vector<4x288xi1>
    %166 = arith.select %165, %163, %161 : vector<4x288xi1>, vector<4x288xf32>
    %167 = vector.shape_cast %6 : vector<1x288xi1> to vector<1x288xi1>
    %168 = vector.broadcast %167 : vector<1x288xi1> to vector<4x288xi1>
    %169 = arith.select %168, %161, %163 : vector<4x288xi1>, vector<4x288xf32>
    %c6_134 = arith.constant 6 : index
    %c0_135 = arith.constant 0 : index
    %c0_136 = arith.constant 0 : index
    %170 = vector.load %arg4[%c6_134, %c0_135, %c0_136] : memref<9x4x4xf32, #tpu.memory_space<vmem>>, vector<1x4x4xf32>
    %171 = vector.shape_cast %170 : vector<1x4x4xf32> to vector<4x4xf32>
    %cst_137 = arith.constant dense<0.000000e+00> : vector<4x288xf32>
    %172 = tpu.matmul %171, %166, %cst_137 {dimension_numbers = #tpu.dot_dimension_numbers<[1], [0], [0], [1], [0, 0, 1, 1], [], []>} : vector<4x4xf32>, vector<4x288xf32>, vector<4x288xf32> -> vector<4x288xf32>
    %c0_138 = arith.constant 0 : index
    %c0_139 = arith.constant 0 : index
    %173 = vector.load %arg7[%c0_138, %c0_139] : memref<4x288xf32, #tpu.memory_space<vmem>>, vector<4x288xf32>
    %174 = arith.addf %173, %172 : vector<4x288xf32>
    %c0_140 = arith.constant 0 : index
    %c0_141 = arith.constant 0 : index
    %175 = vector.load %arg7[%c0_140, %c0_141] : memref<4x288xf32, #tpu.memory_space<vmem>>, vector<4x288xf32>
    tpu.vector_store %arg7[%c0_140, %c0_141], %174 {strides = array<i32>} : memref<4x288xf32, #tpu.memory_space<vmem>>, vector<4x288xf32>,
    %c7_142 = arith.constant 7 : index
    %c0_143 = arith.constant 0 : index
    %c0_144 = arith.constant 0 : index
    %176 = vector.load %arg4[%c7_142, %c0_143, %c0_144] : memref<9x4x4xf32, #tpu.memory_space<vmem>>, vector<1x4x4xf32>
    %177 = vector.shape_cast %176 : vector<1x4x4xf32> to vector<4x4xf32>
    %cst_145 = arith.constant dense<0.000000e+00> : vector<4x288xf32>
    %178 = tpu.matmul %177, %162, %cst_145 {dimension_numbers = #tpu.dot_dimension_numbers<[1], [0], [0], [1], [0, 0, 1, 1], [], []>} : vector<4x4xf32>, vector<4x288xf32>, vector<4x288xf32> -> vector<4x288xf32>
    %c0_146 = arith.constant 0 : index
    %c0_147 = arith.constant 0 : index
    %179 = vector.load %arg7[%c0_146, %c0_147] : memref<4x288xf32, #tpu.memory_space<vmem>>, vector<4x288xf32>
    %180 = arith.addf %179, %178 : vector<4x288xf32>
    %c0_148 = arith.constant 0 : index
    %c0_149 = arith.constant 0 : index
    %181 = vector.load %arg7[%c0_148, %c0_149] : memref<4x288xf32, #tpu.memory_space<vmem>>, vector<4x288xf32>
    tpu.vector_store %arg7[%c0_148, %c0_149], %180 {strides = array<i32>} : memref<4x288xf32, #tpu.memory_space<vmem>>, vector<4x288xf32>,
    %c8_150 = arith.constant 8 : index
    %c0_151 = arith.constant 0 : index
    %c0_152 = arith.constant 0 : index
    %182 = vector.load %arg4[%c8_150, %c0_151, %c0_152] : memref<9x4x4xf32, #tpu.memory_space<vmem>>, vector<1x4x4xf32>
    %183 = vector.shape_cast %182 : vector<1x4x4xf32> to vector<4x4xf32>
    %cst_153 = arith.constant dense<0.000000e+00> : vector<4x288xf32>
    %184 = tpu.matmul %183, %169, %cst_153 {dimension_numbers = #tpu.dot_dimension_numbers<[1], [0], [0], [1], [0, 0, 1, 1], [], []>} : vector<4x4xf32>, vector<4x288xf32>, vector<4x288xf32> -> vector<4x288xf32>
    %c0_154 = arith.constant 0 : index
    %c0_155 = arith.constant 0 : index
    %185 = vector.load %arg7[%c0_154, %c0_155] : memref<4x288xf32, #tpu.memory_space<vmem>>, vector<4x288xf32>
    %186 = arith.addf %185, %184 : vector<4x288xf32>
    %c0_156 = arith.constant 0 : index
    %c0_157 = arith.constant 0 : index
    %187 = vector.load %arg7[%c0_156, %c0_157] : memref<4x288xf32, #tpu.memory_space<vmem>>, vector<4x288xf32>
    tpu.vector_store %arg7[%c0_156, %c0_157], %186 {strides = array<i32>} : memref<4x288xf32, #tpu.memory_space<vmem>>, vector<4x288xf32>,
    %c0_158 = arith.constant 0 : index
    %c0_159 = arith.constant 0 : index
    %188 = vector.load %arg7[%c0_158, %c0_159] : memref<4x288xf32, #tpu.memory_space<vmem>>, vector<4x288xf32>
    %cst_160 = arith.constant 0.000000e+00 : f32
    %189 = vector.shape_cast %2 : vector<1x288xi1> to vector<1x288xi1>
    %190 = vector.broadcast %189 : vector<1x288xi1> to vector<4x288xi1>
    %191 = vector.broadcast %cst_160 : f32 to vector<4x288xf32>
    %192 = arith.select %190, %188, %191 : vector<4x288xi1>, vector<4x288xf32>
    %cst_161 = arith.constant dense<0.000000e+00> : vector<4xf32>
    %193 = vector.multi_reduction <add>, %192, %cst_161 [1] : vector<4x288xf32> to vector<4xf32>
    %194 = vector.shape_cast %193 : vector<4xf32> to vector<4x1xf32>
    %cst_162 = arith.constant 3.906250e-03 : f32
    %195 = vector.broadcast %cst_162 : f32 to vector<4x1xf32>
    %196 = arith.mulf %194, %195 : vector<4x1xf32>
    %197 = arith.mulf %192, %192 : vector<4x288xf32>
    %cst_163 = arith.constant dense<0.000000e+00> : vector<4xf32>
    %198 = vector.multi_reduction <add>, %197, %cst_163 [1] : vector<4x288xf32> to vector<4xf32>
    %199 = vector.shape_cast %198 : vector<4xf32> to vector<4x1xf32>
    %cst_164 = arith.constant 3.906250e-03 : f32
    %200 = vector.broadcast %cst_164 : f32 to vector<4x1xf32>
    %201 = arith.mulf %199, %200 : vector<4x1xf32>
    %202 = arith.mulf %196, %196 : vector<4x1xf32>
    %203 = arith.subf %201, %202 : vector<4x1xf32>
    %cst_165 = arith.constant 0.000000e+00 : f32
    %204 = vector.broadcast %cst_165 : f32 to vector<4x1xf32>
    %205 = arith.maximumf %203, %204 : vector<4x1xf32>
    %206 = vector.broadcast %196 : vector<4x1xf32> to vector<4x288xf32>
    %207 = arith.subf %188, %206 : vector<4x288xf32>
    %cst_166 = arith.constant 9.99999974E-6 : f32
    %208 = vector.broadcast %cst_166 : f32 to vector<4x1xf32>
    %209 = arith.addf %205, %208 : vector<4x1xf32>
    %210 = math.rsqrt %209 : vector<4x1xf32>
    %211 = vector.broadcast %210 : vector<4x1xf32> to vector<4x288xf32>
    %212 = arith.mulf %207, %211 : vector<4x288xf32>
    %cst_167 = arith.constant 0.000000e+00 : f32
    %213 = vector.broadcast %cst_167 : f32 to vector<4x288xf32>
    %214 = arith.maximumf %212, %213 : vector<4x288xf32>
    %215 = vector.extract_strided_slice %8 {offsets = [0, 19], sizes = [4, 288], strides = [1, 1]} : vector<4x326xf32> to vector<4x288xf32>
    %216 = arith.addf %214, %215 : vector<4x288xf32>
    %c0_168 = arith.constant 0 : index
    %c0_169 = arith.constant 0 : index
    %c0_170 = arith.constant 0 : index
    %217 = vector.load %arg5[%c0_168, %c0_169, %c0_170] : memref<1x4x288xf32, #tpu.memory_space<vmem>>, vector<1x4x288xf32>
    %218 = vector.shape_cast %217 : vector<1x4x288xf32> to vector<4x288xf32>
    %219 = vector.shape_cast %216 : vector<4x288xf32> to vector<1x4x288xf32>
    tpu.vector_store %arg5[%c0_168, %c0_169, %c0_170], %219 {strides = array<i32>} : memref<1x4x288xf32, #tpu.memory_space<vmem>>, vector<1x4x288xf32>,
    return
  }
  func.func @transform_0(%arg0: i32) -> (i32, i32) {
    %c0_i32 = arith.constant 0 : i32
    %c0_i32_0 = arith.constant 0 : i32
    %c0_i32_1 = arith.constant 0 : i32
    return %c0_i32, %c0_i32_0 : i32, i32
  }
  func.func @transform_1(%arg0: i32) -> (i32, i32, i32) {
    %c0_i32 = arith.constant 0 : i32
    %c0_i32_0 = arith.constant 0 : i32
    %c0_i32_1 = arith.constant 0 : i32
    return %arg0, %c0_i32, %c0_i32_0 : i32, i32, i32
  }
  func.func @transform_2(%arg0: i32) -> (i32, i32, i32) {
    %c0_i32 = arith.constant 0 : i32
    %c0_i32_0 = arith.constant 0 : i32
    %c0_i32_1 = arith.constant 0 : i32
    %c0_i32_2 = arith.constant 0 : i32
    return %c0_i32, %c0_i32_0, %c0_i32_1 : i32, i32, i32
  }
  func.func @transform_3(%arg0: i32) -> (i32, i32, i32) {
    %c0_i32 = arith.constant 0 : i32
    %c0_i32_0 = arith.constant 0 : i32
    %c0_i32_1 = arith.constant 0 : i32
    %c0_i32_2 = arith.constant 0 : i32
    return %c0_i32, %c0_i32_0, %c0_i32_1 : i32, i32, i32
  }
  func.func @transform_4(%arg0: i32) -> (i32, i32, i32) {
    %c0_i32 = arith.constant 0 : i32
    %c0_i32_0 = arith.constant 0 : i32
    %c0_i32_1 = arith.constant 0 : i32
    return %arg0, %c0_i32, %c0_i32_0 : i32, i32, i32
  }
}

</mosaic_0001>

<bundles_post_ra>
// kernel: tpu_custom_call.1
= control target key start
LH: loop header
LB: loop body
LE: loop exit
PB: predicated region body
PF: predicated region fallthrough
CT: control target
= control target key end

     0   :  { %9 = vsyncpa [#allocation5], 0  ;;  %s3247_s0 = inlined_call_operand.vmem [shape: s32[1,288], index: 0, kind: input, shape index: {}]   ;;  %s3248_s1 = inlined_call_operand.vmem [shape: f32[2,4,326], index: 1, kind: input, shape index: {}]   ;;  %s3249_s2 = inlined_call_operand.vmem [shape: f32[9,4,4], index: 2, kind: input, shape index: {}]   ;;  %s3250_s3 = inlined_call_operand.vmem [shape: f32[9,4,4], index: 3, kind: input, shape index: {}]   ;;  %s3251_s4 = inlined_call_operand.hbm [shape: f32[2,4,288], index: 4, kind: output, shape index: {}]  }
   0x1   :  { %11 = vsyncpa [#allocation5 + $0x1], 0  ;;  %s2648_s15 = smov 0   ;;  %s2650_s16 = smov 0  }
   0x2   :  { %s2652_s17 = smov 0   ;;  %s2654_s18 = smov 0  }
   0x3 LB: > { %s2669_s19 = sadd.s32 4294967295, %s2607_s18   ;;  %s2353_s20 = sadd.s32 4294967294, %s2607_s18   ;;  %s2607_s18 = sphi %s2654_s18, %s3315_s18   ;;  %s2603_s17 = sphi %s2652_s17, %s3314_s17   ;;  %s2599_s16 = sphi %s2650_s16, %s3313_s16   ;;  %s2595_s15 = sphi %s2648_s15, %s3312_s15  }
   0x4   : > { %s2673_s21 = sadd.s32 1, %s2607_s18   ;;  %s113_s22 = sadd.s32 1, %s2603_s17 }
   0x5   : > { %s110_s23 = ssub.s32 %s2607_s18, %s2673_s21  ;;  %p123_p0 = scmp.ne.s32.totalorder %s2603_s17, %s2599_s16 }
   0x6   : > { %p111_p1 = scmp.eq.s32.totalorder %s110_s23, 0  ;;  %p124_p2 = scmp.eq.s32.totalorder %s2669_s19, 1 }
   0x7   : > { %p129_p3 = scmp.ne.s32.totalorder %s2599_s16, %s2595_s15  ;;  %p130_p4 = scmp.eq.s32.totalorder %s2353_s20, 1 }
   0x8   : > { %s2684_s24 = scalar_select %p111_p1, %s2603_s17, %s113_s22  }
   0x9   : > { %p2686_p5 = por %p124_p2, %p123_p0  ;;  %p2690_p6 = por %p130_p4, %p129_p3 }
   0xa   : > { %p2356_p7 = scmp.ge.s32.totalorder %s2607_s18, 1  ;;  %p165_p8 = scmp.lt.s32.totalorder %s2607_s18, 3 }
   0xc   : > { %p166_p9 = pnand %p2356_p7, %p165_p8 }
   0xd   : > { %p191_p10 = scmp.lt.s32.totalorder (!%p166_p9), %s2669_s19, 1  ;;  %s2609_s6 = smov (!%p166_p9), 127  }
   0xe   : > { %169 = sbr.rel (%p166_p9) target bundleno = 1227 (0x4cb), region = 36  ;;  %s2610_s7 = smov (!%p166_p9), 126  }
   0xf   : > { %s2611_s8 = smov (!%p166_p9), 110   ;;  %s2612_s9 = smov (!%p166_p9), 109  }
  0x10   : > { %s2613_s10 = smov (!%p166_p9), 108   ;;  %s2614_s11 = smov (!%p166_p9), 92  }
  0x11   : > { %s2615_s12 = smov (!%p166_p9), 91   ;;  %s2616_s13 = smov (!%p166_p9), 90  }
  0x12   : > { %s2619_s22 = smov (!%p166_p9), 19   ;;  %s2620_s23 = smov (!%p166_p9), 55  }
  0x13   : > { %s192_s27 = scalar_select %p191_p10, %s2669_s19, 1  ;;  %vm215_vm0 = vcmask 1043456   ;;  %v202_v29 = vld [vmem:[%s3249_s2] sm:$0xf]  ;;  %vm211_vm1 = vcmask 31744   ;;  %vm3259_vm2 = vcmask 1039360  }
  0x14   : > { %v2364_v34 = vld [vmem:[%s3249_s2 + $0x4] sm:$0xf]  ;;  %vm401_vm3 = vcmask 1031168   ;;  %v2371_v42 = vld [vmem:[%s3249_s2 + $0x8] sm:$0xf]  ;;  %vm3258_vm4 = vcmask 900096  }
  0x15   : > { %s2486_s28 = smul.u32 12, %s192_s27  ;;  %v2378_v47 = vld [vmem:[%s3249_s2 + $0xc] sm:$0xf]  ;;  %vm3256_vm5 = vcmask 891904   ;;  %v2385_v52 = vld [vmem:[%s3249_s2 + $0x10] sm:$0xf] }
  0x16   : > { %vm3257_vm6 = vcmask 883712   ;;  %v2392_v57 = vld [vmem:[%s3249_s2 + $0x14] sm:$0xf]  ;;  %vm3254_vm7 = vcmask 752640   ;;  %v2399_v62 = vld [vmem:[%s3249_s2 + $0x18] sm:$0xf] }
  0x17   : > { %s195_s5 = scalar_lea.vmem %s3248_s1, %s2486_s28  ;;  %vm3253_vm8 = vcmask 744448   ;;  %vm3255_vm9 = vcmask 736256   ;;  %vm3252_vm10 = vcmask 257024   ;;  %s2621_s27 = smov 111  }
  0x18   : > { %v2701_v0 = vld [vmem:[%s195_s5] sm:$0xff]  ;;  %v2703_v1 = vld [vmem:[%s195_s5 + $0x8] sm:$0xf] }
  0x19   : > { %205 = vst [vmem:[#allocation1] ss:$2 sm:$0xff] %v2701_v0 }
  0x1a   : > { %207 = vst [vmem:[#allocation1 + $0x10] ss:$2 sm:$0xff] %v2703_v1 }
  0x20   : > { %v2707_v2 = vld.sshfl [vmem:[#allocation1] sm:$0xff pattern:$0x75316420]  ;;  %v2709_v3 = vld.sshfl [vmem:[#allocation1 + $0x8] sm:$0xff pattern:$0x75316420] }
  0x21   : > { %292 = vst [vmem:[#allocation1] ss:$2 sm:$0xff] %v2701_v0  ;;  %v2712_v4 = vld.sshfl [vmem:[#allocation1 + $0x10] sm:$0xff pattern:$0x75316420]  ;;  %2360 = vmatpush.msk.msra.mxu1 %vm215_vm0, %v2709_v3  ;;  %2358 = vmatpush.msk.msra.mxu0 %vm215_vm0, %v2707_v2 }
  0x22   : > { %294 = vst [vmem:[#allocation1 + $0x10] ss:$2 sm:$0xff] %v2703_v1  ;;  %2362 = vmatpush.msk.msra.mxu2 %vm215_vm0, %v2712_v4  ;;  %2361 = vmatmul.msk.f32.vlgmr.msra.gmra.mxu1 %vm211_vm1, %v202_v29 }
  0x23   : > { %2363 = vmatmul.msk.f32.vlgmr.msra.gmra.mxu2 %vm211_vm1, %v202_v29  ;;  %2359 = vmatmul.msk.f32.vlgmr.msra.gmra.mxu0 %vm211_vm1, %v202_v29 }
  0x28   : > { %v295_v5 = vld.sshfl [vmem:[#allocation1] sm:$0xff pattern:$0x75316420]  ;;  %v296_v6 = vld.sshfl [vmem:[#allocation1 + $0x8] sm:$0xff pattern:$0x75316420] }
  0x29   : > { %298 = vrot.lane.b32.xlu0 %v295_v5, %s2609_s6  ;;  %v297_v7 = vld.sshfl [vmem:[#allocation1 + $0x10] sm:$0xff pattern:$0x75316420]  ;;  %389 = vst [vmem:[#allocation1] ss:$2 sm:$0xff] %v2701_v0 }
  0x2a   : > { %302 = vrot.lane.b32.xlu1 %v297_v7, %s2609_s6  ;;  %391 = vst [vmem:[#allocation1 + $0x10] ss:$2 sm:$0xff] %v2703_v1 }
  0x30   : > { %v393_v8 = vld.sshfl [vmem:[#allocation1 + $0x8] sm:$0xff pattern:$0x75316420]  ;;  %v392_v9 = vld.sshfl [vmem:[#allocation1] sm:$0xff pattern:$0x75316420] }
  0x31   : > { %300 = vrot.lane.b32.xlu0 %v296_v6, %s2609_s6  ;;  %486 = vst [vmem:[#allocation1] ss:$2 sm:$0xff] %v2701_v0  ;;  %v394_v10 = vld.sshfl [vmem:[#allocation1 + $0x10] sm:$0xff pattern:$0x75316420] }
  0x32   : > { %397 = vrot.lane.b32.xlu1 %v393_v8, %s2610_s7  ;;  %488 = vst [vmem:[#allocation1 + $0x10] ss:$2 sm:$0xff] %v2703_v1  ;;  %399 = vrot.lane.b32.xlu2 %v394_v10, %s2610_s7  ;;  %v2406_v6 = vld [vmem:[%s3249_s2 + $0x1c] sm:$0xf] }
  0x38   : > { %v490_v11 = vld.sshfl [vmem:[#allocation1 + $0x8] sm:$0xff pattern:$0x75316420]  ;;  %v489_v12 = vld.sshfl [vmem:[#allocation1] sm:$0xff pattern:$0x75316420] }
  0x39   : > { %v491_v13 = vld.sshfl [vmem:[#allocation1 + $0x10] sm:$0xff pattern:$0x75316420]  ;;  %494 = vrot.lane.b32.xlu0 %v490_v11, %s2611_s8  ;;  %583 = vst [vmem:[#allocation1] ss:$2 sm:$0xff] %v2701_v0 }
  0x3a   : > { %496 = vrot.lane.b32.xlu1 %v491_v13, %s2611_s8  ;;  %585 = vst [vmem:[#allocation1 + $0x10] ss:$2 sm:$0xff] %v2703_v1  ;;  %395 = vrot.lane.b32.xlu2 %v392_v9, %s2610_s7 }
  0x40   : > { %v587_v14 = vld.sshfl [vmem:[#allocation1 + $0x8] sm:$0xff pattern:$0x75316420]  ;;  %v586_v15 = vld.sshfl [vmem:[#allocation1] sm:$0xff pattern:$0x75316420] }
  0x41   : > { %v588_v16 = vld.sshfl [vmem:[#allocation1 + $0x10] sm:$0xff pattern:$0x75316420]  ;;  %591 = vrot.lane.b32.xlu0 %v587_v14, %s2612_s9  ;;  %680 = vst [vmem:[#allocation1] ss:$2 sm:$0xff] %v2701_v0 }
  0x42   : > { %593 = vrot.lane.b32.xlu1 %v588_v16, %s2612_s9  ;;  %682 = vst [vmem:[#allocation1 + $0x10] ss:$2 sm:$0xff] %v2703_v1  ;;  %492 = vrot.lane.b32.xlu2 %v489_v12, %s2611_s8  ;;  %v2413_v14 = vld [vmem:[%s3249_s2 + $0x20] sm:$0xf] }
  0x48   : > { %v684_v17 = vld.sshfl [vmem:[#allocation1 + $0x8] sm:$0xff pattern:$0x75316420]  ;;  %v683_v18 = vld.sshfl [vmem:[#allocation1] sm:$0xff pattern:$0x75316420] }
  0x49   : > { %686 = vrot.lane.b32.xlu0 %v683_v18, %s2613_s10  ;;  %777 = vst [vmem:[#allocation1] ss:$2 sm:$0xff] %v2701_v0  ;;  %v685_v19 = vld.sshfl [vmem:[#allocation1 + $0x10] sm:$0xff pattern:$0x75316420] }
  0x4a   : > { %688 = vrot.lane.b32.xlu1 %v684_v17, %s2613_s10  ;;  %779 = vst [vmem:[#allocation1 + $0x10] ss:$2 sm:$0xff] %v2703_v1  ;;  %589 = vrot.lane.b32.xlu2 %v586_v15, %s2612_s9 }
  0x50   : > { %v781_v20 = vld.sshfl [vmem:[#allocation1 + $0x8] sm:$0xff pattern:$0x75316420]  ;;  %v780_v21 = vld.sshfl [vmem:[#allocation1] sm:$0xff pattern:$0x75316420] }
  0x51   : > { %v782_v22 = vld.sshfl [vmem:[#allocation1 + $0x10] sm:$0xff pattern:$0x75316420]  ;;  %785 = vrot.lane.b32.xlu0 %v781_v20, %s2614_s11  ;;  %874 = vst [vmem:[#allocation1] ss:$2 sm:$0xff] %v2701_v0 }
  0x52   : > { %787 = vrot.lane.b32.xlu1 %v782_v22, %s2614_s11  ;;  %876 = vst [vmem:[#allocation1 + $0x10] ss:$2 sm:$0xff] %v2703_v1  ;;  %690 = vrot.lane.b32.xlu2 %v685_v19, %s2613_s10 }
  0x58   : > { %v878_v23 = vld.sshfl [vmem:[#allocation1 + $0x8] sm:$0xff pattern:$0x75316420]  ;;  %v877_v24 = vld.sshfl [vmem:[#allocation1] sm:$0xff pattern:$0x75316420] }
  0x59   : > { %v879_v25 = vld.sshfl [vmem:[#allocation1 + $0x10] sm:$0xff pattern:$0x75316420]  ;;  %882 = vrot.lane.b32.xlu0 %v878_v23, %s2615_s12  ;;  %971 = vst [vmem:[#allocation1] ss:$2 sm:$0xff] %v2701_v0 }
  0x5a   : > { %884 = vrot.lane.b32.xlu1 %v879_v25, %s2615_s12  ;;  %973 = vst [vmem:[#allocation1 + $0x10] ss:$2 sm:$0xff] %v2703_v1  ;;  %783 = vrot.lane.b32.xlu2 %v780_v21, %s2614_s11 }
  0x60   : > { %v975_v26 = vld.sshfl [vmem:[#allocation1 + $0x8] sm:$0xff pattern:$0x75316420]  ;;  %v974_v28 = vld.sshfl [vmem:[#allocation1] sm:$0xff pattern:$0x75316420] }
  0x61   : > { %v976_v27 = vld.sshfl [vmem:[#allocation1 + $0x10] sm:$0xff pattern:$0x75316420]  ;;  %979 = vrot.lane.b32.xlu0 %v975_v26, %s2616_s13 }
  0x62   : > { %981 = vrot.lane.b32.xlu1 %v976_v27, %s2616_s13  ;;  %880 = vrot.lane.b32.xlu2 %v877_v24, %s2615_s12 }
  0x6a   : > { %977 = vrot.lane.b32.xlu2 %v974_v28, %s2616_s13 }
  0x8c   : > { %v400_v30 = vpop.permute.xlu2 %399 }
  0x94   : > { %v396_v31 = vpop.permute.xlu2 %395 }
  0x9b   : > { %v299_v32 = vpop.permute.xlu0 %298 }
  0x9c   : > { %v303_v33 = vpop.permute.xlu1 %302  ;;  %v493_v35 = vpop.permute.xlu2 %492 }
  0x9d   : > { %2369 = vmatpush.msk.msrb.mxu1 %vm215_vm0, %v303_v33 }
  0x9e   : > { %2370 = vmatmul.msk.f32.vlgmr.msrb.gmra.mxu1 %vm211_vm1, %v2364_v34 }
  0x9f   : > { %v259_v17 = vpop.f32.mrf.mxu1 }
  0xa0   : > { %v239_v19 = vpop.f32.mrf.mxu0 }
  0xa3   : > { %v301_v36 = vpop.permute.xlu0 %300 }
  0xa4   : > { %v305_v37 = vsel %vm3259_vm2, %v299_v32, %v301_v36  ;;  %v398_v38 = vpop.permute.xlu1 %397  ;;  %v306_v39 = vsel %vm3259_vm2, %v301_v36, %v303_v33  ;;  %v590_v44 = vpop.permute.xlu2 %589  ;;  %vm1171_vm2 = vcmask 544152  }
  0xa5   : > { %2365 = vmatpush.msk.msra.mxu3 %vm215_vm0, %v305_v37  ;;  %2367 = vmatpush.msk.msrb.mxu0 %vm215_vm0, %v306_v39  ;;  %v403_v40 = vsel %vm401_vm3, %v398_v38, %v400_v30  ;;  %v402_v41 = vsel %vm401_vm3, %v396_v31, %v398_v38  ;;  %v284_v38 = vrot.slane %v259_v17, 4 }
  0xa6   : > { %2366 = vmatmul.msk.f32.vlgmr.msra.gmra.mxu3 %vm211_vm1, %v2364_v34  ;;  %2368 = vmatmul.msk.f32.vlgmr.msrb.gmra.mxu0 %vm211_vm1, %v2364_v34  ;;  %v279_v16 = vpop.f32.mrf.mxu2 }
  0xa7   : > { %2376 = vmatpush.msk.msra.mxu0 %vm215_vm0, %v400_v30  ;;  %2374 = vmatpush.msk.msrb.mxu3 %vm215_vm0, %v403_v40  ;;  %289 = vst.msk [vmem:[#allocation3 + $0x8] sm:$0xf] %vm3252_vm10, %v279_v16 }
  0xa8   : > { %2372 = vmatpush.msk.msrb.mxu2 %vm215_vm0, %v402_v41 }
  0xa9   : > { %2373 = vmatmul.msk.f32.vlgmr.msrb.gmra.mxu2 %vm211_vm1, %v2371_v42 }
  0xab   : > { %v495_v43 = vpop.permute.xlu0 %494 }
  0xac   : > { %v497_v45 = vpop.permute.xlu1 %496  ;;  %v499_v46 = vsel %vm3258_vm4, %v493_v35, %v495_v43  ;;  %v691_v54 = vpop.permute.xlu2 %690 }
  0xad   : > { %v500_v48 = vsel %vm3258_vm4, %v495_v43, %v497_v45  ;;  %2383 = vmatpush.msk.msra.mxu3 %vm215_vm0, %v497_v45  ;;  %2379 = vmatpush.msk.msra.mxu1 %vm215_vm0, %v499_v46  ;;  %v285_v46 = vsel %vm215_vm0, %v239_v19, %v284_v38  ;;  %vm1168_vm4 = vcmask 449536  }
  0xae   : > { %2375 = vmatmul.msk.f32.vlgmr.msrb.gmra.mxu3 %vm211_vm1, %v2371_v42  ;;  %2381 = vmatpush.msk.msra.mxu2 %vm215_vm0, %v500_v48  ;;  %v377_v18 = vld [vmem:[#allocation3 + $0x8] sm:$0xf] }
  0xaf   : > { %2377 = vmatmul.msk.f32.vlgmr.msra.gmra.mxu0 %vm211_vm1, %v2371_v42  ;;  %2380 = vmatmul.msk.f32.vlgmr.msra.gmra.mxu1 %vm211_vm1, %v2378_v47 }
  0xb1   : > { %2382 = vmatmul.msk.f32.vlgmr.msra.gmra.mxu2 %vm211_vm1, %v2378_v47 }
  0xb3   : > { %v592_v49 = vpop.permute.xlu0 %591 }
  0xb4   : > { %v594_v50 = vpop.permute.xlu1 %593  ;;  %v596_v51 = vsel %vm3256_vm5, %v590_v44, %v592_v49  ;;  %v784_v60 = vpop.permute.xlu2 %783 }
  0xb5   : > { %v597_v53 = vsel %vm3256_vm5, %v592_v49, %v594_v50  ;;  %2390 = vmatpush.msk.msrb.mxu2 %vm215_vm0, %v594_v50  ;;  %2386 = vmatpush.msk.msrb.mxu0 %vm215_vm0, %v596_v51  ;;  %vm1173_vm5 = vcmask 3072  }
  0xb6   : > { %2384 = vmatmul.msk.f32.vlgmr.msra.gmra.mxu3 %vm211_vm1, %v2378_v47  ;;  %2388 = vmatpush.msk.msrb.mxu1 %vm215_vm0, %v597_v53 }
  0xb7   : > { %2389 = vmatmul.msk.f32.vlgmr.msrb.gmra.mxu1 %vm211_vm1, %v2385_v52  ;;  %2387 = vmatmul.msk.f32.vlgmr.msrb.gmra.mxu0 %vm211_vm1, %v2385_v52 }
  0xb8   : > { %2397 = vmatpush.msk.msra.mxu1 %vm215_vm0, %v691_v54 }
  0xb9   : > { %2391 = vmatmul.msk.f32.vlgmr.msrb.gmra.mxu2 %vm211_vm1, %v2385_v52 }
  0xbb   : > { %v687_v55 = vpop.permute.xlu0 %686 }
  0xbc   : > { %v689_v56 = vpop.permute.xlu1 %688  ;;  %v881_v4 = vpop.permute.xlu2 %880 }
  0xbd   : > { %v694_v58 = vsel %vm3257_vm6, %v689_v56, %v691_v54  ;;  %v693_v59 = vsel %vm3257_vm6, %v687_v55, %v689_v56  ;;  %vm1175_vm6 = vcmask 150664  }
  0xbe   : > { %2393 = vmatpush.msk.msrb.mxu3 %vm215_vm0, %v693_v59  ;;  %2395 = vmatpush.msk.msra.mxu0 %vm215_vm0, %v694_v58 }
  0xbf   : > { %2394 = vmatmul.msk.f32.vlgmr.msrb.gmra.mxu3 %vm211_vm1, %v2392_v57  ;;  %2396 = vmatmul.msk.f32.vlgmr.msra.gmra.mxu0 %vm211_vm1, %v2392_v57 }
  0xc0   : > { %2398 = vmatmul.msk.f32.vlgmr.msra.gmra.mxu1 %vm211_vm1, %v2392_v57 }
  0xc3   : > { %v786_v61 = vpop.permute.xlu0 %785 }
  0xc4   : > { %v788_v63 = vpop.permute.xlu1 %787  ;;  %v790_v2 = vsel %vm3254_vm7, %v784_v60, %v786_v61  ;;  %v978_v10 = vpop.permute.xlu2 %977 }
  0xc5   : > { %v791_v3 = vsel %vm3254_vm7, %v786_v61, %v788_v63  ;;  %2404 = vmatpush.msk.msrb.mxu0 %vm215_vm0, %v788_v63  ;;  %2400 = vmatpush.msk.msra.mxu2 %vm215_vm0, %v790_v2  ;;  %vm1156_vm7 = vcmask 412672  }
  0xc6   : > { %2402 = vmatpush.msk.msra.mxu3 %vm215_vm0, %v791_v3  ;;  %2401 = vmatmul.msk.f32.vlgmr.msra.gmra.mxu2 %vm211_vm1, %v2399_v62 }
  0xc7   : > { %2403 = vmatmul.msk.f32.vlgmr.msra.gmra.mxu3 %vm211_vm1, %v2399_v62  ;;  %2405 = vmatmul.msk.f32.vlgmr.msrb.gmra.mxu0 %vm211_vm1, %v2399_v62 }
  0xcb   : > { %v883_v5 = vpop.permute.xlu0 %882 }
  0xcc   : > { %v885_v7 = vpop.permute.xlu1 %884  ;;  %v887_v8 = vsel %vm3253_vm8, %v881_v4, %v883_v5 }
  0xcd   : > { %v888_v9 = vsel %vm3253_vm8, %v883_v5, %v885_v7  ;;  %2411 = vmatpush.msk.msrb.mxu3 %vm215_vm0, %v885_v7  ;;  %2407 = vmatpush.msk.msrb.mxu1 %vm215_vm0, %v887_v8  ;;  %vm1152_vm8 = vcmask 1043608  }
  0xce   : > { %2409 = vmatpush.msk.msrb.mxu2 %vm215_vm0, %v888_v9  ;;  %2408 = vmatmul.msk.f32.vlgmr.msrb.gmra.mxu1 %vm211_vm1, %v2406_v6 }
  0xcf   : > { %2410 = vmatmul.msk.f32.vlgmr.msrb.gmra.mxu2 %vm211_vm1, %v2406_v6  ;;  %2412 = vmatmul.msk.f32.vlgmr.msrb.gmra.mxu3 %vm211_vm1, %v2406_v6 }
  0xd3   : > { %v980_v11 = vpop.permute.xlu0 %979 }
  0xd4   : > { %v982_v12 = vpop.permute.xlu1 %981  ;;  %v984_v13 = vsel %vm3255_vm9, %v978_v10, %v980_v11 }
  0xd5   : > { %v985_v15 = vsel %vm3255_vm9, %v980_v11, %v982_v12  ;;  %2418 = vmatpush.msk.msra.mxu2 %vm215_vm0, %v982_v12  ;;  %2414 = vmatpush.msk.msra.mxu0 %vm215_vm0, %v984_v13  ;;  %vm1161_vm9 = vcmask 134152  }
  0xd6   : > { %2416 = vmatpush.msk.msra.mxu1 %vm215_vm0, %v985_v15  ;;  %2415 = vmatmul.msk.f32.vlgmr.msra.gmra.mxu0 %vm211_vm1, %v2413_v14 }
  0xd7   : > { %2419 = vmatmul.msk.f32.vlgmr.msra.gmra.mxu2 %vm211_vm1, %v2413_v14  ;;  %2417 = vmatmul.msk.f32.vlgmr.msra.gmra.mxu1 %vm211_vm1, %v2413_v14 }
 0x11b   : > { %v373_v20 = vpop.f32.mrf.mxu1 }
 0x11c   : > { %v384_v21 = vadd.f32 %v377_v18, %v373_v20  ;;  %v2876_v20 = vld [vmem:[%s3247_s0] sm:$0x7] }
 0x11d   : > { %vm197_vm11 = vcmp.lt.s32.totalorder %v2876_v20, 16 }
 0x11e   : > { %386 = vst.msk [vmem:[#allocation3 + $0x8] sm:$0xf] %vm3252_vm10, %v384_v21 }
 0x123   : > { %v353_v22 = vpop.f32.mrf.mxu0 }
 0x124   : > { %v380_v36 = vrot.slane %v353_v22, 4 }
 0x125   : > { %v474_v24 = vld [vmem:[#allocation3 + $0x8] sm:$0xf] }
 0x129   : > { %v333_v23 = vpop.f32.mrf.mxu3 }
 0x12a   : > { %v381_v43 = vsel %vm215_vm0, %v333_v23, %v380_v36  ;;  %v2617_v23 = vmov 0  }
 0x12b   : > { %v383_v49 = vadd.f32 %v381_v43, %v285_v46 }
 0x12c   : > { %v470_v25 = vpop.f32.mrf.mxu0  ;;  %v430_v26 = vpop.f32.mrf.mxu2 }
 0x12d   : > { %v481_v27 = vadd.f32 %v474_v24, %v470_v25  ;;  %v527_v28 = vpop.f32.mrf.mxu1  ;;  %v1068_v24 = vsel %vm197_vm11, 1, %v2617_v23 }
 0x12f   : > { %483 = vst.msk [vmem:[#allocation3 + $0x8] sm:$0xf] %vm3252_vm10, %v481_v27  ;;  %v1070_v27 = vperm.slane %v1068_v24, 1 }
 0x131   : > { %v450_v29 = vpop.f32.mrf.mxu3  ;;  %vm2885_vm13 = vcmp.eq.s32.totalorder %v1070_v27, 1 }
 0x132   : > { %v477_v39 = vrot.slane %v450_v29, 4 }
 0x134   : > { %v547_v31 = vpop.f32.mrf.mxu2  ;;  %v624_v32 = vpop.f32.mrf.mxu0  ;;  %v478_v47 = vsel %vm215_vm0, %v430_v26, %v477_v39  ;;  %v1069_v26 = vperm.slane %v1068_v24, 0 }
 0x135   : > { %v644_v34 = vpop.f32.mrf.mxu1  ;;  %v574_v48 = vrot.slane %v547_v31, 4  ;;  %v480_v50 = vadd.f32 %v478_v47, %v383_v49 }
 0x136   : > { %v571_v30 = vld [vmem:[#allocation3 + $0x8] sm:$0xf]  ;;  %v671_v52 = vrot.slane %v644_v34, 4  ;;  %vm2881_vm12 = vcmp.eq.s32.totalorder %v1069_v26, 1 }
 0x137   : > { %v575_v51 = vsel %vm215_vm0, %v527_v28, %v574_v48 }
 0x138   : > { %v577_v58 = vadd.f32 %v575_v51, %v480_v50  ;;  %v672_v59 = vsel %vm215_vm0, %v624_v32, %v671_v52 }
 0x139   : > { %v567_v33 = vpop.f32.mrf.mxu3 }
 0x13a   : > { %v578_v35 = vadd.f32 %v571_v30, %v567_v33  ;;  %v674_v2 = vadd.f32 %v672_v59, %v577_v58 }
 0x13c   : > { %580 = vst.msk [vmem:[#allocation3 + $0x8] sm:$0xf] %vm3252_vm10, %v578_v35  ;;  %v664_v37 = vpop.f32.mrf.mxu2  ;;  %v741_v41 = vpop.f32.mrf.mxu0  ;;  %v1071_v35 = vperm.slane %v1068_v24, 2 }
 0x13d   : > { %v761_v40 = vpop.f32.mrf.mxu1  ;;  %v768_v56 = vrot.slane %v741_v41, 4 }
 0x13e   : > { %vm2893_vm14 = vcmp.eq.s32.totalorder %v1071_v35, 1 }
 0x142   : > { %v721_v42 = vpop.f32.mrf.mxu3 }
 0x143   : > { %v668_v44 = vld [vmem:[#allocation3 + $0x8] sm:$0xf]  ;;  %v769_v63 = vsel %vm215_vm0, %v721_v42, %v768_v56 }
 0x144   : > { %v675_v45 = vadd.f32 %v668_v44, %v664_v37  ;;  %v858_v55 = vpop.f32.mrf.mxu0  ;;  %v771_v4 = vadd.f32 %v769_v63, %v674_v2 }
 0x146   : > { %677 = vst.msk [vmem:[#allocation3 + $0x8] sm:$0xf] %vm3252_vm10, %v675_v45 }
 0x149   : > { %v818_v53 = vpop.f32.mrf.mxu2 }
 0x14a   : > { %v838_v54 = vpop.f32.mrf.mxu3 }
 0x14b   : > { %v915_v57 = vpop.f32.mrf.mxu1  ;;  %v865_v61 = vrot.slane %v838_v54, 4 }
 0x14d   : > { %v765_v60 = vld [vmem:[#allocation3 + $0x8] sm:$0xf]  ;;  %v866_v3 = vsel %vm215_vm0, %v818_v53, %v865_v61  ;;  %v2618_v61 = vmov 839922192  }
 0x14e   : > { %v772_v62 = vadd.f32 %v765_v60, %v761_v40  ;;  %v868_v7 = vadd.f32 %v866_v3, %v771_v4 }
 0x150   : > { %774 = vst.msk [vmem:[#allocation3 + $0x8] sm:$0xf] %vm3252_vm10, %v772_v62  ;;  %v1113_v62 = vunpack.c.l.s4 %v2618_v61 }
 0x152   : > { %v935_v5 = vpop.f32.mrf.mxu2  ;;  %v955_v17 = vpop.f32.mrf.mxu3  ;;  %v2905_v3 = vunpack.c.0.s8 %v1113_v62 }
 0x153   : > { %v962_v6 = vrot.slane %v935_v5, 4  ;;  %v1012_v9 = vpop.f32.mrf.mxu0 }
 0x154   : > { %v1032_v8 = vpop.f32.mrf.mxu1 }
 0x155   : > { %v963_v10 = vsel %vm215_vm0, %v915_v57, %v962_v6  ;;  %v1059_v11 = vrot.slane %v1032_v8, 4 }
 0x156   : > { %v965_v12 = vadd.f32 %v963_v10, %v868_v7 }
 0x157   : > { %v862_v13 = vld [vmem:[#allocation3 + $0x8] sm:$0xf]  ;;  %v1060_v14 = vsel %vm215_vm0, %v1012_v9, %v1059_v11 }
 0x158   : > { %v869_v15 = vadd.f32 %v862_v13, %v858_v55  ;;  %v2868_v16 = vadd.f32 %v1060_v14, %v965_v12 }
 0x15a   : > { %871 = vst.msk [vmem:[#allocation3 + $0x8] sm:$0xf] %vm3252_vm10, %v869_v15  ;;  %v1052_v21 = vpop.f32.mrf.mxu2 }
 0x15b   : > { %1077 = vst [vmem:[#allocation1] ss:$2 sm:$0xff] %v2868_v16 }
 0x161   : > { %v959_v18 = vld [vmem:[#allocation3 + $0x8] sm:$0xf] }
 0x162   : > { %v966_v19 = vadd.f32 %v959_v18, %v955_v17  ;;  %v1080_v30 = vld.sshfl [vmem:[#allocation1] sm:$0xff pattern:$0x75316420]  ;;  %v1081_v31 = vld.sshfl [vmem:[#allocation1 + $0x8] sm:$0xff pattern:$0x75316420] }
 0x163   : > { %v1086_v33 = vsel %vm2881_vm12, %v1080_v30, 0.0  ;;  %v1087_v34 = vsel %vm2885_vm13, %v1081_v31, 0.0 }
 0x164   : > { %968 = vst.msk [vmem:[#allocation3 + $0x8] sm:$0xf] %vm3252_vm10, %v966_v19  ;;  %v1097_v36 = vmul.f32 %v1086_v33, %v1086_v33  ;;  %v1098_v37 = vmul.f32 %v1087_v34, %v1087_v34  ;;  %v1089_v39 = vsel %vm215_vm0, %v1086_v33, 0.0  ;;  %v1090_v40 = vsel %vm215_vm0, %v1087_v34, 0.0 }
 0x165   : > { %v1091_v45 = vadd.f32 %v1090_v40, %v1089_v39 }
 0x166   : > { %v1100_v42 = vsel %vm215_vm0, %v1097_v36, 0.0  ;;  %v1101_v43 = vsel %vm215_vm0, %v1098_v37, 0.0 }
 0x167   : > { %v1102_v49 = vadd.f32 %v1101_v43, %v1100_v42 }
 0x16b   : > { %v1056_v22 = vld [vmem:[#allocation3 + $0x8] sm:$0xf] }
 0x16c   : > { %v1063_v25 = vadd.f32 %v1056_v22, %v1052_v21 }
 0x16e   : > { %1065 = vst.msk [vmem:[#allocation3 + $0x8] sm:$0xf] %vm3252_vm10, %v1063_v25  ;;  %v2622_v25 = vmov 0.0  }
 0x175   : > { %v1067_v32 = vld [vmem:[#allocation3 + $0x8] sm:$0xf] }
 0x176   : > { %1079 = vst [vmem:[#allocation1 + $0x10] ss:$2 sm:$0xff] %v1067_v32 }
 0x17d   : > { %v1082_v41 = vld.sshfl [vmem:[#allocation1 + $0x10] sm:$0xff pattern:$0x75316420] }
 0x17e   : > { %v1088_v44 = vsel %vm2893_vm14, %v1082_v41, 0.0 }
 0x17f   : > { %v1092_v46 = vsel %vm3252_vm10, %v1088_v44, 0.0  ;;  %v1099_v47 = vmul.f32 %v1088_v44, %v1088_v44 }
 0x180   : > { %v1093_v48 = vadd.f32 %v1092_v46, %v1091_v45 }
 0x181   : > { %v1103_v50 = vsel %vm3252_vm10, %v1099_v47, 0.0 }
 0x182   : > { %1094 = vadd.xlane.f32.xlu0 %v1093_v48  ;;  %v1104_v51 = vadd.f32 %v1103_v50, %v1102_v49 }
 0x184   : > { %1105 = vadd.xlane.f32.xlu1 %v1104_v51 }
 0x1f5   : > { %v1095_v52 = vpop.xlane.xlu0 %1094 }
 0x1f6   : > { %v1096_v53 = vmul.f32 0.00390625, %v1095_v52 }
 0x1f7   : > { %v1106_v54 = vpop.xlane.xlu1 %1105 }
 0x1f8   : > { %v1108_v55 = vmul.f32 %v1096_v53, %v1096_v53  ;;  %v1107_v56 = vmul.f32 0.00390625, %v1106_v54  ;;  %v1115_v6 = vperm.slane %v1096_v53, %v2905_v3 }
 0x1fa   : > { %v1109_v57 = vsub.f32 %v1107_v56, %v1108_v55  ;;  %v1117_v9 = vsub.f32 %v2868_v16, %v1115_v6  ;;  %v1118_v13 = vsub.f32 %v1067_v32, %v1115_v6 }
 0x1fc   : > { %v1110_v58 = vmax.f32 %v1109_v57, 0.0 }
 0x1fe   : > { %v1119_v59 = vadd.f32 1e-05, %v1110_v58 }
 0x200   : > { %2541 = vrsqrt.f32 %v1119_v59  ;;  %vm1126_vm11 = vweird.f32 %v1119_v59 }
 0x206   : > { %v2542_v60 = vpop.eup %2541 }
 0x207   : > { %v1121_v63 = vmul.f32 %v2542_v60, %v1119_v59  ;;  %vm1127_vm15 = vweird.f32 %v2542_v60 }
 0x208   : > { %vm1128_vm10 = vmor %vm1126_vm11, %vm1127_vm15  ;;  %vm1153_vm15 = vcmask 1047556  }
 0x209   : > { %v1122_v2 = vmul.f32 %v2542_v60, %v1121_v63  ;;  %vm1154_vm11 = vmor %vm1153_vm15, %vm1152_vm8  ;;  %vm1177_vm8 = vcmask 568856   ;;  %vm3276_vm15 = vcmask 1039360  }
 0x20b   : > { %v1123_v4 = vmul.f32 0.5, %v1122_v2 }
 0x20d   : > { %v1124_v5 = vsub.f32 1.5, %v1123_v4 }
 0x20f   : > { %v1125_v7 = vmul.f32 %v2542_v60, %v1124_v5 }
 0x211   : > { %v1129_v8 = vsel %vm1128_vm10, %v2542_v60, %v1125_v7  ;;  %vm1147_vm10 = vcmask 154624  }
 0x212   : > { %v1134_v10 = vperm.slane %v1129_v8, %v2905_v3 }
 0x214   : > { %v1136_v11 = vmul.f32 %v1134_v10, %v1117_v9  ;;  %v1137_v14 = vmul.f32 %v1134_v10, %v1118_v13 }
 0x216   : > { %v1138_v12 = vmax.f32 %v1136_v11, 0.0  ;;  %v1139_v15 = vmax.f32 %v1137_v14, 0.0 }
 0x218   : > { %1142 = vrot.lane.b32.xlu2 %v1138_v12, %s2619_s22 }
 0x220   : > { %1163 = vrot.lane.b32.xlu2 %v1138_v12, %s2620_s23 }
 0x228   : > { %1144 = vrot.lane.b32.xlu2 %v1139_v15, %s2619_s22  ;;  %s2565_s22 = scalar_lea.hbm %s3251_s4, 24 }
 0x230   : > { %1158 = vrot.lane.b32.xlu2 %v1138_v12, %s2621_s27 }
 0x238   : > { %1165 = vrot.lane.b32.xlu2 %v1139_v15, %s2620_s23 }
 0x272   : > { %v1143_v17 = vpop.permute.xlu2 %1142 }
 0x273   : > { %v1146_v16 = vrot.slane %v1143_v17, 4 }
 0x275   : > { %v1148_v18 = vsel %vm1147_vm10, %v1146_v16, %v1143_v17 }
 0x276   : > { %1155 = vst.msk [vmem:[#allocation2] sm:$0xff] %vm1154_vm11, %v1148_v18 }
 0x27a   : > { %v1164_v19 = vpop.permute.xlu2 %1163 }
 0x27b   : > { %v1167_v26 = vrot.slane %v1164_v19, 4 }
 0x282   : > { %v1145_v21 = vpop.permute.xlu2 %1144 }
 0x283   : > { %v1149_v22 = vsel %vm1147_vm10, %v1146_v16, %v1145_v21 }
 0x284   : > { %1157 = vst.msk [vmem:[#allocation2 + $0x8] sm:$0xf] %vm1156_vm7, %v1149_v22  ;;  %vm199_vm7 = vcmp.eq.s32.totalorder %v2876_v20, 15 }
 0x28a   : > { %v1159_v24 = vpop.permute.xlu2 %1158 }
 0x28b   : > { %1162 = vst.msk [vmem:[#allocation2] sm:$0xf] %vm1161_vm9, %v1159_v24 }
 0x28c   : > { %1174 = vst.msk [vmem:[#allocation2] sm:$0xf] %vm1173_vm5, %v2622_v25 }
 0x28d   : > { %1176 = vst.msk [vmem:[#allocation2] sm:$0xf] %vm1175_vm6, %v2622_v25 }
 0x292   : > { %v1166_v27 = vpop.permute.xlu2 %1165 }
 0x293   : > { %v1169_v30 = vsel %vm1168_vm4, %v1167_v26, %v1166_v27 }
 0x294   : > { %v2910_v31 = vld [vmem:[#allocation2] sm:$0xff]  ;;  %1172 = vst.msk [vmem:[#allocation2 + $0x8] sm:$0xf] %vm1171_vm2, %v1169_v30  ;;  %vm198_vm2 = vcmp.eq.s32.totalorder %v2876_v20, 0 }
 0x295   : > { %1190 = vst [vmem:[#allocation1] ss:$2 sm:$0xff] %v2910_v31  ;;  %v1181_v14 = vsel %vm198_vm2, 1, %v2617_v23  ;;  %vm3283_vm2 = vcmask 883712  }
 0x296   : > { %1178 = vst.msk [vmem:[#allocation2 + $0x8] sm:$0xf] %vm1177_vm8, %v2622_v25  ;;  %v1182_v15 = vperm.slane %v1181_v14, 0  ;;  %v1184_v24 = vperm.slane %v1181_v14, 2  ;;  %v1183_v25 = vperm.slane %v1181_v14, 1  ;;  %vm3281_vm8 = vmmov %vm3276_vm15 }
 0x298   : > { %vm2989_vm4 = vcmp.eq.s32.totalorder %v1182_v15, 1  ;;  %vm3001_vm5 = vcmp.eq.s32.totalorder %v1184_v24, 1  ;;  %vm3006_vm6 = vcmp.eq.s32.totalorder %v1183_v25, 1 }
 0x29c   : > { %v1193_v32 = vld.sshfl [vmem:[#allocation1] sm:$0xff pattern:$0x75316420]  ;;  %v1194_v33 = vld.sshfl [vmem:[#allocation1 + $0x8] sm:$0xff pattern:$0x75316420] }
 0x29d   : > { %1207 = vst [vmem:[#allocation1] ss:$2 sm:$0xff] %v2910_v31  ;;  %v2914_v34 = vld [vmem:[#allocation2 + $0x8] sm:$0xf]  ;;  %1198 = vrot.lane.b32.xlu0 %v1194_v33, %s2610_s7  ;;  %1196 = vrot.lane.b32.xlu2 %v1193_v32, %s2610_s7 }
 0x29e   : > { %1192 = vst [vmem:[#allocation1 + $0x10] ss:$2 sm:$0xff] %v2914_v34 }
 0x2a4   : > { %v2919_v35 = vld.sshfl [vmem:[#allocation1] sm:$0xff pattern:$0x75316420]  ;;  %v2921_v36 = vld.sshfl [vmem:[#allocation1 + $0x8] sm:$0xff pattern:$0x75316420] }
 0x2a5   : > { %1226 = vst [vmem:[#allocation1] ss:$2 sm:$0xff] %v2910_v31  ;;  %v1195_v37 = vld.sshfl [vmem:[#allocation1 + $0x10] sm:$0xff pattern:$0x75316420] }
 0x2a6   : > { %1200 = vrot.lane.b32.xlu1 %v1195_v37, %s2610_s7  ;;  %1209 = vst [vmem:[#allocation1 + $0x10] ss:$2 sm:$0xff] %v2914_v34 }
 0x2ac   : > { %v2926_v39 = vld.sshfl [vmem:[#allocation1] sm:$0xff pattern:$0x75316420]  ;;  %v2928_v40 = vld.sshfl [vmem:[#allocation1 + $0x8] sm:$0xff pattern:$0x75316420] }
 0x2ad   : > { %1235 = vst [vmem:[#allocation1] ss:$2 sm:$0xff] %v2910_v31  ;;  %v2931_v41 = vld.sshfl [vmem:[#allocation1 + $0x10] sm:$0xff pattern:$0x75316420] }
 0x2ae   : > { %1228 = vst [vmem:[#allocation1 + $0x10] ss:$2 sm:$0xff] %v2914_v34 }
 0x2b4   : > { %v1238_v42 = vld.sshfl [vmem:[#allocation1] sm:$0xff pattern:$0x75316420]  ;;  %v1239_v43 = vld.sshfl [vmem:[#allocation1 + $0x8] sm:$0xff pattern:$0x75316420] }
 0x2b5   : > { %1337 = vst [vmem:[#allocation1] ss:$2 sm:$0xff] %v2910_v31  ;;  %1243 = vrot.lane.b32.xlu2 %v1239_v43, %s2610_s7  ;;  %1241 = vrot.lane.b32.xlu0 %v1238_v42, %s2610_s7  ;;  %v2937_v44 = vld.sshfl [vmem:[#allocation1 + $0x10] sm:$0xff pattern:$0x75316420]  ;;  %v1219_v43 = vsel %vm199_vm7, 1, %v2617_v23 }
 0x2b6   : > { %1237 = vst [vmem:[#allocation1 + $0x10] ss:$2 sm:$0xff] %v2914_v34  ;;  %v1220_v20 = vperm.slane %v1219_v43, 0 }
 0x2b8   : > { %vm3032_vm9 = vcmp.eq.s32.totalorder %v1220_v20, 1  ;;  %v2461_v20 = vld [vmem:[%s3250_s3 + $0x18] sm:$0xf] }
 0x2bc   : > { %v1340_v45 = vld.sshfl [vmem:[#allocation1] sm:$0xff pattern:$0x75316420]  ;;  %v1341_v46 = vld.sshfl [vmem:[#allocation1 + $0x8] sm:$0xff pattern:$0x75316420] }
 0x2bd   : > { %1516 = vst [vmem:[#allocation1] ss:$2 sm:$0xff] %v2910_v31  ;;  %1343 = vrot.lane.b32.xlu0 %v1340_v45, %s2609_s6  ;;  %v1240_v47 = vld.sshfl [vmem:[#allocation1 + $0x10] sm:$0xff pattern:$0x75316420] }
 0x2be   : > { %1245 = vrot.lane.b32.xlu1 %v1240_v47, %s2610_s7  ;;  %1339 = vst [vmem:[#allocation1 + $0x10] ss:$2 sm:$0xff] %v2914_v34  ;;  %s188_s7 = sand.u32 1, %s2599_s16  }
 0x2bf   : > { %s2278_s29 = scalar_lea.sflag [#allocation5], %s188_s7 }
 0x2c4   : > { %v1519_v48 = vld.sshfl [vmem:[#allocation1] sm:$0xff pattern:$0x75316420]  ;;  %v1520_v49 = vld.sshfl [vmem:[#allocation1 + $0x8] sm:$0xff pattern:$0x75316420] }
 0x2c5   : > { %1533 = vst [vmem:[#allocation1] ss:$2 sm:$0xff] %v2910_v31  ;;  %v1342_v50 = vld.sshfl [vmem:[#allocation1 + $0x10] sm:$0xff pattern:$0x75316420] }
 0x2c6   : > { %1347 = vrot.lane.b32.xlu2 %v1342_v50, %s2609_s6  ;;  %1518 = vst [vmem:[#allocation1 + $0x10] ss:$2 sm:$0xff] %v2914_v34  ;;  %v2433_v50 = vld [vmem:[%s3250_s3 + $0x8] sm:$0xf] }
 0x2cc   : > { %v1536_v51 = vld.sshfl [vmem:[#allocation1] sm:$0xff pattern:$0x75316420]  ;;  %v1537_v52 = vld.sshfl [vmem:[#allocation1 + $0x8] sm:$0xff pattern:$0x75316420] }
 0x2cd   : > { %1553 = vst [vmem:[#allocation1] ss:$2 sm:$0xff] %v2910_v31  ;;  %1541 = vrot.lane.b32.xlu0 %v1537_v52, %s2611_s8  ;;  %v1521_v53 = vld.sshfl [vmem:[#allocation1 + $0x10] sm:$0xff pattern:$0x75316420]  ;;  %v1221_v52 = vperm.slane %v1219_v43, 1 }
 0x2ce   : > { %1345 = vrot.lane.b32.xlu2 %v1341_v46, %s2609_s6  ;;  %1526 = vrot.lane.b32.xlu1 %v1521_v53, %s2613_s10  ;;  %1535 = vst [vmem:[#allocation1 + $0x10] ss:$2 sm:$0xff] %v2914_v34 }
 0x2cf   : > { %vm3058_vm11 = vcmp.eq.s32.totalorder %v1221_v52, 1 }
 0x2d4   : > { %v1556_v54 = vld.sshfl [vmem:[#allocation1] sm:$0xff pattern:$0x75316420]  ;;  %v1557_v55 = vld.sshfl [vmem:[#allocation1 + $0x8] sm:$0xff pattern:$0x75316420] }
 0x2d5   : > { %1570 = vst [vmem:[#allocation1] ss:$2 sm:$0xff] %v2910_v31  ;;  %1539 = vrot.lane.b32.xlu0 %v1536_v51, %s2611_s8  ;;  %v1538_v56 = vld.sshfl [vmem:[#allocation1 + $0x10] sm:$0xff pattern:$0x75316420]  ;;  %v1222_v51 = vperm.slane %v1219_v43, 2 }
 0x2d6   : > { %1524 = vrot.lane.b32.xlu2 %v1520_v49, %s2613_s10  ;;  %1522 = vrot.lane.b32.xlu1 %v1519_v48, %s2613_s10  ;;  %1555 = vst [vmem:[#allocation1 + $0x10] ss:$2 sm:$0xff] %v2914_v34 }
 0x2d7   : > { %vm3054_vm10 = vcmp.eq.s32.totalorder %v1222_v51, 1 }
 0x2dc   : > { %v1573_v57 = vld.sshfl [vmem:[#allocation1] sm:$0xff pattern:$0x75316420]  ;;  %v1574_v58 = vld.sshfl [vmem:[#allocation1 + $0x8] sm:$0xff pattern:$0x75316420] }
 0x2dd   : > { %1677 = vst [vmem:[#allocation1] ss:$2 sm:$0xff] %v2910_v31  ;;  %1578 = vrot.lane.b32.xlu0 %v1574_v58, %s2613_s10  ;;  %v1558_v59 = vld.sshfl [vmem:[#allocation1 + $0x10] sm:$0xff pattern:$0x75316420] }
 0x2de   : > { %1543 = vrot.lane.b32.xlu2 %v1538_v56, %s2611_s8  ;;  %1563 = vrot.lane.b32.xlu1 %v1558_v59, %s2611_s8  ;;  %1572 = vst [vmem:[#allocation1 + $0x10] ss:$2 sm:$0xff] %v2914_v34 }
 0x2e4   : > { %v1680_v60 = vld.sshfl [vmem:[#allocation1] sm:$0xff pattern:$0x75316420]  ;;  %v1681_v61 = vld.sshfl [vmem:[#allocation1 + $0x8] sm:$0xff pattern:$0x75316420] }
 0x2e5   : > { %1856 = vst [vmem:[#allocation1] ss:$2 sm:$0xff] %v2910_v31  ;;  %v1575_v62 = vld.sshfl [vmem:[#allocation1 + $0x10] sm:$0xff pattern:$0x75316420] }
 0x2e6   : > { %1561 = vrot.lane.b32.xlu2 %v1557_v55, %s2611_s8  ;;  %1685 = vrot.lane.b32.xlu1 %v1681_v61, %s2612_s9  ;;  %1679 = vst [vmem:[#allocation1 + $0x10] ss:$2 sm:$0xff] %v2914_v34 }
 0x2ec   : > { %v1859_v63 = vld.sshfl [vmem:[#allocation1] sm:$0xff pattern:$0x75316420]  ;;  %v1860_v2 = vld.sshfl [vmem:[#allocation1 + $0x8] sm:$0xff pattern:$0x75316420] }
 0x2ed   : > { %1873 = vst [vmem:[#allocation1] ss:$2 sm:$0xff] %v2910_v31  ;;  %v1682_v4 = vld.sshfl [vmem:[#allocation1 + $0x10] sm:$0xff pattern:$0x75316420] }
 0x2ee   : > { %1559 = vrot.lane.b32.xlu1 %v1556_v54, %s2611_s8  ;;  %1580 = vrot.lane.b32.xlu2 %v1575_v62, %s2613_s10  ;;  %1858 = vst [vmem:[#allocation1 + $0x10] ss:$2 sm:$0xff] %v2914_v34  ;;  %s2485_s8 = smul.u32 12, %s188_s7 }
 0x2ef   : > { %1687 = vrot.lane.b32.xlu0 %v1682_v4, %s2612_s9  ;;  %v2440_v4 = vld [vmem:[%s3250_s3 + $0xc] sm:$0xf] }
 0x2f4   : > { %v1876_v5 = vld.sshfl [vmem:[#allocation1] sm:$0xff pattern:$0x75316420]  ;;  %v1877_v6 = vld.sshfl [vmem:[#allocation1 + $0x8] sm:$0xff pattern:$0x75316420] }
 0x2f5   : > { %1893 = vst [vmem:[#allocation1] ss:$2 sm:$0xff] %v2910_v31  ;;  %v1861_v7 = vld.sshfl [vmem:[#allocation1 + $0x10] sm:$0xff pattern:$0x75316420] }
 0x2f6   : > { %1683 = vrot.lane.b32.xlu2 %v1680_v60, %s2612_s9  ;;  %1866 = vrot.lane.b32.xlu1 %v1861_v7, %s2616_s13  ;;  %1875 = vst [vmem:[#allocation1 + $0x10] ss:$2 sm:$0xff] %v2914_v34 }
 0x2f7   : > { %1576 = vrot.lane.b32.xlu0 %v1573_v57, %s2613_s10  ;;  %v1197_v18 = vpop.permute.xlu2 %1196  ;;  %s2487_s10 = smul.u32 12, %s2669_s19  ;;  %s190_s19 = scalar_lea.vmem [#allocation4], %s2485_s8 }
 0x2fc   : > { %v1896_v8 = vld.sshfl [vmem:[#allocation1] sm:$0xff pattern:$0x75316420]  ;;  %v1897_v9 = vld.sshfl [vmem:[#allocation1 + $0x8] sm:$0xff pattern:$0x75316420] }
 0x2fd   : > { %1910 = vst [vmem:[#allocation1] ss:$2 sm:$0xff] %v2910_v31  ;;  %v1878_v10 = vld.sshfl [vmem:[#allocation1 + $0x10] sm:$0xff pattern:$0x75316420] }
 0x2fe   : > { %1864 = vrot.lane.b32.xlu2 %v1860_v2, %s2616_s13  ;;  %1862 = vrot.lane.b32.xlu1 %v1859_v63, %s2616_s13  ;;  %1895 = vst [vmem:[#allocation1 + $0x10] ss:$2 sm:$0xff] %v2914_v34 }
 0x2ff   : > { %1881 = vrot.lane.b32.xlu0 %v1877_v6, %s2614_s11 }
 0x304   : > { %v1914_v11 = vld.sshfl [vmem:[#allocation1 + $0x8] sm:$0xff pattern:$0x75316420]  ;;  %v1913_v12 = vld.sshfl [vmem:[#allocation1] sm:$0xff pattern:$0x75316420] }
 0x305   : > { %v1898_v13 = vld.sshfl [vmem:[#allocation1 + $0x10] sm:$0xff pattern:$0x75316420]  ;;  %2017 = vst [vmem:[#allocation1] ss:$2 sm:$0xff] %v2910_v31 }
 0x306   : > { %1883 = vrot.lane.b32.xlu2 %v1878_v10, %s2614_s11  ;;  %1912 = vst [vmem:[#allocation1 + $0x10] ss:$2 sm:$0xff] %v2914_v34 }
 0x307   : > { %1879 = vrot.lane.b32.xlu0 %v1876_v5, %s2614_s11 }
 0x30c   : > { %v2021_v26 = vld.sshfl [vmem:[#allocation1 + $0x8] sm:$0xff pattern:$0x75316420]  ;;  %v2020_v30 = vld.sshfl [vmem:[#allocation1] sm:$0xff pattern:$0x75316420] }
 0x30d   : > { %v1915_v17 = vld.sshfl [vmem:[#allocation1 + $0x10] sm:$0xff pattern:$0x75316420] }
 0x30e   : > { %2019 = vst [vmem:[#allocation1 + $0x10] ss:$2 sm:$0xff] %v2914_v34  ;;  %1899 = vrot.lane.b32.xlu2 %v1896_v8, %s2614_s11 }
 0x30f   : > { %1916 = vrot.lane.b32.xlu0 %v1913_v12, %s2616_s13  ;;  %v1199_v19 = vpop.permute.xlu0 %1198  ;;  %v1244_v33 = vpop.permute.xlu2 %1243 }
 0x310   : > { %v1202_v21 = vsel %vm401_vm3, %v1197_v18, %v1199_v19 }
 0x311   : > { %v1216_v22 = vsel %vm2989_vm4, %v1202_v21, %v2919_v35  ;;  %v2447_v21 = vld [vmem:[%s3250_s3 + $0x10] sm:$0xf] }
 0x312   : > { %2420 = vmatpush.msk.msra.mxu3 %vm215_vm0, %v1216_v22 }
 0x315   : > { %v2022_v27 = vld.sshfl [vmem:[#allocation1 + $0x10] sm:$0xff pattern:$0x75316420] }
 0x316   : > { %2025 = vrot.lane.b32.xlu2 %v2021_v26, %s2615_s12  ;;  %2027 = vrot.lane.b32.xlu1 %v2022_v27, %s2615_s12 }
 0x317   : > { %2023 = vrot.lane.b32.xlu0 %v2020_v30, %s2615_s12  ;;  %v2454_v30 = vld [vmem:[%s3250_s3 + $0x14] sm:$0xf] }
 0x318   : > { %v1201_v34 = vpop.permute.xlu1 %1200 }
 0x319   : > { %v1203_v35 = vsel %vm401_vm3, %v1199_v19, %v1201_v34  ;;  %v1218_v37 = vsel %vm3001_vm5, %v1201_v34, %v2931_v41  ;;  %v1255_v41 = vld [vmem:[%s3250_s3] sm:$0xf] }
 0x31a   : > { %v1217_v42 = vsel %vm3006_vm6, %v1203_v35, %v2921_v36  ;;  %2424 = vmatpush.msk.msrb.mxu1 %vm215_vm0, %v1218_v37  ;;  %2421 = vmatmul.msk.f32.vlgmr.msra.gmra.mxu3 %vm211_vm1, %v1255_v41 }
 0x31b   : > { %2422 = vmatpush.msk.msrb.mxu0 %vm215_vm0, %v1217_v42  ;;  %2425 = vmatmul.msk.f32.vlgmr.msrb.gmra.mxu1 %vm211_vm1, %v1255_v41 }
 0x31c   : > { %2423 = vmatmul.msk.f32.vlgmr.msrb.gmra.mxu0 %vm211_vm1, %v1255_v41 }
 0x31e   : > { %1918 = vrot.lane.b32.xlu2 %v1914_v11, %s2616_s13  ;;  %1901 = vrot.lane.b32.xlu1 %v1897_v9, %s2614_s11 }
 0x31f   : > { %1920 = vrot.lane.b32.xlu0 %v1915_v17, %s2616_s13  ;;  %s2291_s13 = sshll.u32 %s190_s19, 4  ;;  %s2292_s13 = int_to_ptr.vmem [resolvable:$true] %s2291_s13 }
 0x320   : > { %v1348_v45 = vpop.permute.xlu2 %1347 }
 0x321   : > { %2431 = vmatpush.msk.msra.mxu0 %vm215_vm0, %v1348_v45 }
 0x326   : > { %1903 = vrot.lane.b32.xlu1 %v1898_v13, %s2614_s11 }
 0x327   : > { %v1242_v23 = vpop.permute.xlu0 %1241  ;;  %2263 = vrot.lane.b32.xlu0 %v2701_v0, %s2612_s9  ;;  %v2426_v0 = vld [vmem:[%s3250_s3 + $0x4] sm:$0xf] }
 0x328   : > { %v1247_v46 = vsel %vm401_vm3, %v1242_v23, %v1244_v33  ;;  %v1346_v47 = vpop.permute.xlu2 %1345  ;;  %2432 = vmatmul.msk.f32.vlgmr.msra.gmra.mxu0 %vm211_vm1, %v2426_v0 }
 0x329   : > { %v1252_v48 = vsel %vm3032_vm9, %v2926_v39, %v1247_v46  ;;  %v1350_v49 = vsel %vm3276_vm15, %v1346_v47, %v1348_v45  ;;  %vm3285_vm15 = vmmov %vm3283_vm2 }
 0x32a   : > { %2429 = vmatpush.msk.msrb.mxu3 %vm215_vm0, %v1350_v49  ;;  %2434 = vmatpush.msk.msra.mxu1 %vm215_vm0, %v1252_v48 }
 0x32b   : > { %2430 = vmatmul.msk.f32.vlgmr.msrb.gmra.mxu3 %vm211_vm1, %v2426_v0  ;;  %2435 = vmatmul.msk.f32.vlgmr.msra.gmra.mxu1 %vm211_vm1, %v2433_v50 }
 0x32f   : > { %v1344_v53 = vpop.permute.xlu0 %1343  ;;  %2265 = vrot.lane.b32.xlu0 %v2703_v1, %s2612_s9  ;;  %s2289_s9 = scalar_lea.hbm %s3251_s4, %s2487_s10 }
 0x330   : > { %v1349_v55 = vsel %vm3281_vm8, %v1344_v53, %v1346_v47  ;;  %v1246_v56 = vpop.permute.xlu1 %1245  ;;  %v1525_v57 = vpop.permute.xlu2 %1524  ;;  %vm3286_vm8 = vmmov %vm3283_vm2  ;;  %s2293_s28 = sshll.u32 %s2289_s9, 4  ;;  %s2294_s28 = int_to_ptr.hbm [resolvable:$true] %s2293_s28 }
 0x331   : > { %v1248_v58 = vsel %vm401_vm3, %v1244_v33, %v1246_v56  ;;  %v1254_v59 = vsel %vm3054_vm10, %v2937_v44, %v1246_v56  ;;  %2427 = vmatpush.msk.msrb.mxu2 %vm215_vm0, %v1349_v55  ;;  %vm3282_vm3 = vcmask 900096   ;;  %v2468_v55 = vld [vmem:[%s3250_s3 + $0x1c] sm:$0xf]  ;;  %s2559_s30 = sshra.s32 %s2294_s28, 4  ;;  %s2560_s30 = int_to_ptr.hbm [resolvable:$true] %s2559_s30 }
 0x332   : > { %v1253_v60 = vsel %vm3058_vm11, %v2928_v40, %v1248_v58  ;;  %2438 = vmatpush.msk.msra.mxu3 %vm215_vm0, %v1254_v59  ;;  %2428 = vmatmul.msk.f32.vlgmr.msrb.gmra.mxu2 %vm211_vm1, %v2426_v0  ;;  %vm3284_vm7 = vmmov %vm3282_vm3  ;;  %s2561_s5 = scalar_lea.hbm %s2560_s30, 12  ;;  %p2566_p0 = scmp.lt.s32.totalorder %s2560_s30, %s3251_s4 }
 0x333   : > { %2436 = vmatpush.msk.msra.mxu2 %vm215_vm0, %v1253_v60  ;;  %2439 = vmatmul.msk.f32.vlgmr.msra.gmra.mxu3 %vm211_vm1, %v2433_v50  ;;  %p2562_p11 = scmp.ne.s32.totalorder %s2560_s30, %s2561_s5  ;;  %p2567_p1 = scmp.lt.s32.totalorder %s2565_s22, %s2561_s5 }
 0x335   : > { %p2563_p12 = pnand %p2562_p11, %p2686_p5  ;;  %p2568_p2 = por %p2567_p1, %p2566_p0 }
 0x337   : > { %p2564_p13 = pneg %p2563_p12 }
 0x338   : > { %v1544_v1 = vpop.permute.xlu2 %1543 }
 0x339   : > { %p2569_p3 = pnand %p2568_p2, %p2564_p13 }
 0x33a   : > { %2437 = vmatmul.msk.f32.vlgmr.msra.gmra.mxu2 %vm211_vm1, %v2433_v50 }
 0x33f   : > { %v1542_v61 = vpop.permute.xlu0 %1541 }
 0x340   : > { %v1546_v44 = vsel %vm3282_vm3, %v1542_v61, %v1544_v1  ;;  %v1527_v62 = vpop.permute.xlu1 %1526  ;;  %v1562_v63 = vpop.permute.xlu2 %1561 }
 0x341   : > { %v1529_v2 = vsel %vm3283_vm2, %v1525_v57, %v1527_v62  ;;  %v1552_v40 = vsel %vm3001_vm5, %v1527_v62, %v1544_v1  ;;  %vm3287_vm2 = vcmask 891904  }
 0x342   : > { %v1551_v5 = vsel %vm3006_vm6, %v1529_v2, %v1546_v44  ;;  %2445 = vmatpush.msk.msrb.mxu2 %vm215_vm0, %v1552_v40  ;;  %v2475_v44 = vld [vmem:[%s3250_s3 + $0x20] sm:$0xf] }
 0x343   : > { %2443 = vmatpush.msk.msrb.mxu1 %vm215_vm0, %v1551_v5  ;;  %2446 = vmatmul.msk.f32.vlgmr.msrb.gmra.mxu2 %vm211_vm1, %v2440_v4 }
 0x344   : > { %2444 = vmatmul.msk.f32.vlgmr.msrb.gmra.mxu1 %vm211_vm1, %v2440_v4 }
 0x347   : > { %v1540_v6 = vpop.permute.xlu0 %1539 }
 0x348   : > { %v1545_v7 = vsel %vm3284_vm7, %v1540_v6, %v1542_v61  ;;  %v1523_v8 = vpop.permute.xlu1 %1522  ;;  %v1581_v11 = vpop.permute.xlu2 %1580  ;;  %vm3288_vm7 = vmmov %vm3287_vm2 }
 0x349   : > { %v1528_v9 = vsel %vm3285_vm15, %v1523_v8, %v1525_v57  ;;  %vm3289_vm15 = vmmov %vm3282_vm3 }
 0x34a   : > { %v1550_v10 = vsel %vm2989_vm4, %v1528_v9, %v1545_v7 }
 0x34b   : > { %2441 = vmatpush.msk.msrb.mxu0 %vm215_vm0, %v1550_v10 }
 0x34c   : > { %2442 = vmatmul.msk.f32.vlgmr.msrb.gmra.mxu0 %vm211_vm1, %v2440_v4 }
 0x34f   : > { %v1579_v13 = vpop.permute.xlu0 %1578 }
 0x350   : > { %v1564_v12 = vpop.permute.xlu1 %1563  ;;  %v1684_v14 = vpop.permute.xlu2 %1683  ;;  %v1583_v15 = vsel %vm3286_vm8, %v1579_v13, %v1581_v11 }
 0x351   : > { %v1566_v17 = vsel %vm3282_vm3, %v1562_v63, %v1564_v12  ;;  %v1589_v26 = vsel %vm3054_vm10, %v1564_v12, %v1581_v11  ;;  %vm3291_vm3 = vcmask 752640  }
 0x352   : > { %v1588_v22 = vsel %vm3058_vm11, %v1566_v17, %v1583_v15 }
 0x358   : > { %v1686_v18 = vpop.permute.xlu1 %1685  ;;  %v1865_v24 = vpop.permute.xlu2 %1864 }
 0x359   : > { %v1689_v19 = vsel %vm3287_vm2, %v1684_v14, %v1686_v18 }
 0x35a   : > { %2448 = vmatpush.msk.msrb.mxu3 %vm215_vm0, %v1689_v19 }
 0x35b   : > { %2449 = vmatmul.msk.f32.vlgmr.msrb.gmra.mxu3 %vm211_vm1, %v2447_v21 }
 0x35c   : > { %2457 = vmatpush.msk.msra.mxu3 %vm215_vm0, %v1588_v22 }
 0x360   : > { %v1560_v25 = vpop.permute.xlu1 %1559  ;;  %v1884_v34 = vpop.permute.xlu2 %1883 }
 0x361   : > { %v1688_v27 = vpop.permute.xlu0 %1687  ;;  %v1565_v43 = vsel %vm3289_vm15, %v1560_v25, %v1562_v63 }
 0x362   : > { %v1690_v33 = vsel %vm3288_vm7, %v1686_v18, %v1688_v27  ;;  %2452 = vmatpush.msk.msra.mxu1 %vm215_vm0, %v1688_v27  ;;  %vm3293_vm7 = vmmov %vm3291_vm3 }
 0x363   : > { %2450 = vmatpush.msk.msra.mxu0 %vm215_vm0, %v1690_v33  ;;  %2453 = vmatmul.msk.f32.vlgmr.msra.gmra.mxu1 %vm211_vm1, %v2447_v21 }
 0x364   : > { %2458 = vmatmul.msk.f32.vlgmr.msra.gmra.mxu3 %vm211_vm1, %v2454_v30  ;;  %2451 = vmatmul.msk.f32.vlgmr.msra.gmra.mxu0 %vm211_vm1, %v2447_v21 }
 0x365   : > { %2459 = vmatpush.msk.msrb.mxu0 %vm215_vm0, %v1589_v26 }
 0x368   : > { %v1867_v35 = vpop.permute.xlu1 %1866  ;;  %v1900_v52 = vpop.permute.xlu2 %1899 }
 0x369   : > { %v1577_v37 = vpop.permute.xlu0 %1576  ;;  %v1892_v42 = vsel %vm3001_vm5, %v1867_v35, %v1884_v34  ;;  %vm3290_vm5 = vcmask 736256  }
 0x36a   : > { %v1582_v41 = vsel %vm3286_vm8, %v1577_v37, %v1579_v13  ;;  %2466 = vmatpush.msk.msrb.mxu3 %vm215_vm0, %v1892_v42  ;;  %v1869_v23 = vsel %vm3290_vm5, %v1865_v24, %v1867_v35  ;;  %vm3292_vm2 = vmmov %vm3290_vm5 }
 0x36b   : > { %v1587_v45 = vsel %vm3032_vm9, %v1565_v43, %v1582_v41  ;;  %vm3297_vm8 = vmmov %vm3291_vm3 }
 0x36c   : > { %2455 = vmatpush.msk.msra.mxu2 %vm215_vm0, %v1587_v45  ;;  %2467 = vmatmul.msk.f32.vlgmr.msrb.gmra.mxu3 %vm211_vm1, %v2461_v20  ;;  %vm3298_vm5 = vmmov %vm3292_vm2 }
 0x36d   : > { %2456 = vmatmul.msk.f32.vlgmr.msra.gmra.mxu2 %vm211_vm1, %v2454_v30  ;;  %2460 = vmatmul.msk.f32.vlgmr.msrb.gmra.mxu0 %vm211_vm1, %v2454_v30 }
 0x370   : > { %v1863_v48 = vpop.permute.xlu1 %1862  ;;  %v2026_v53 = vpop.permute.xlu2 %2025 }
 0x371   : > { %v1882_v31 = vpop.permute.xlu0 %1881  ;;  %v1868_v50 = vsel %vm3292_vm2, %v1863_v48, %v1865_v24 }
 0x372   : > { %v1886_v46 = vsel %vm3291_vm3, %v1882_v31, %v1884_v34 }
 0x373   : > { %v1891_v47 = vsel %vm3006_vm6, %v1869_v23, %v1886_v46  ;;  %vm3294_vm6 = vcmask 744448  }
 0x374   : > { %2464 = vmatpush.msk.msrb.mxu2 %vm215_vm0, %v1891_v47  ;;  %vm3295_vm15 = vmmov %vm3294_vm6 }
 0x375   : > { %2465 = vmatmul.msk.f32.vlgmr.msrb.gmra.mxu2 %vm211_vm1, %v2461_v20 }
 0x378   : > { %v1919_v59 = vpop.permute.xlu2 %1918 }
 0x379   : > { %v1880_v49 = vpop.permute.xlu0 %1879 }
 0x37a   : > { %v1885_v51 = vsel %vm3293_vm7, %v1880_v49, %v1882_v31 }
 0x37b   : > { %v1890_v0 = vsel %vm2989_vm4, %v1868_v50, %v1885_v51  ;;  %vm3296_vm4 = vmmov %vm3292_vm2 }
 0x37c   : > { %2462 = vmatpush.msk.msrb.mxu1 %vm215_vm0, %v1890_v0 }
 0x37d   : > { %2463 = vmatmul.msk.f32.vlgmr.msrb.gmra.mxu1 %vm211_vm1, %v2461_v20 }
 0x381   : > { %v1917_v32 = vpop.permute.xlu0 %1916 }
 0x382   : > { %v1922_v1 = vsel %vm3296_vm4, %v1917_v32, %v1919_v59 }
 0x388   : > { %v2028_v56 = vpop.permute.xlu1 %2027 }
 0x389   : > { %v2024_v57 = vpop.permute.xlu0 %2023  ;;  %v2030_v58 = vsel %vm3294_vm6, %v2026_v53, %v2028_v56  ;;  %2473 = vmatpush.msk.msra.mxu2 %vm215_vm0, %v2028_v56 }
 0x38a   : > { %v2029_v16 = vsel %vm3295_vm15, %v2024_v57, %v2026_v53  ;;  %2471 = vmatpush.msk.msra.mxu1 %vm215_vm0, %v2030_v58  ;;  %2474 = vmatmul.msk.f32.vlgmr.msra.gmra.mxu2 %vm211_vm1, %v2468_v55 }
 0x38b   : > { %2469 = vmatpush.msk.msra.mxu0 %vm215_vm0, %v2029_v16  ;;  %2472 = vmatmul.msk.f32.vlgmr.msra.gmra.mxu1 %vm211_vm1, %v2468_v55 }
 0x38c   : > { %2470 = vmatmul.msk.f32.vlgmr.msra.gmra.mxu0 %vm211_vm1, %v2468_v55 }
 0x390   : > { %v1902_v60 = vpop.permute.xlu1 %1901 }
 0x391   : > { %v1905_v61 = vsel %vm3297_vm8, %v1900_v52, %v1902_v60  ;;  %v1921_v63 = vpop.permute.xlu0 %1920 }
 0x392   : > { %v1927_v62 = vsel %vm3032_vm9, %v1905_v61, %v1922_v1  ;;  %v1923_v40 = vsel %vm3298_vm5, %v1919_v59, %v1921_v63  ;;  %vm3299_vm9 = vcmask 257024  }
 0x393   : > { %2476 = vmatpush.msk.msra.mxu3 %vm215_vm0, %v1927_v62 }
 0x394   : > { %2477 = vmatmul.msk.f32.vlgmr.msra.gmra.mxu3 %vm211_vm1, %v2475_v44 }
 0x398   : > { %v1904_v2 = vpop.permute.xlu1 %1903  ;;  %v1325_v36 = vpop.f32.mrf.mxu1 }
 0x399   : > { %v1906_v4 = vsel %vm3291_vm3, %v1902_v60, %v1904_v2  ;;  %v1929_v5 = vsel %vm3054_vm10, %v1904_v2, %v1921_v63  ;;  %1334 = vst.msk [vmem:[#allocation3 + $0x8] sm:$0xf] %vm3299_vm9, %v1325_v36  ;;  %v1305_v7 = vpop.f32.mrf.mxu0  ;;  %vm3300_vm10 = vmmov %vm3299_vm9  ;;  %vm3310_vm3 = vcmask 891904  }
 0x39a   : > { %v1928_v6 = vsel %vm3058_vm11, %v1906_v4, %v1923_v40  ;;  %2480 = vmatpush.msk.msrb.mxu1 %vm215_vm0, %v1929_v5  ;;  %v1330_v8 = vrot.slane %v1305_v7, 4 }
 0x39b   : > { %2478 = vmatpush.msk.msrb.mxu0 %vm215_vm0, %v1928_v6  ;;  %2481 = vmatmul.msk.f32.vlgmr.msrb.gmra.mxu1 %vm211_vm1, %v2475_v44 }
 0x39c   : > { %2479 = vmatmul.msk.f32.vlgmr.msrb.gmra.mxu0 %vm211_vm1, %v2475_v44  ;;  %vm3301_vm1 = vmmov %vm3299_vm9 }
 0x39d   : > { %v1285_v9 = vpop.f32.mrf.mxu3  ;;  %vm3302_vm11 = vmmov %vm3301_vm1 }
 0x39e   : > { %v1331_v39 = vsel %vm215_vm0, %v1285_v9, %v1330_v8  ;;  %vm3303_vm2 = vmmov %vm3301_vm1 }
 0x39f   : > { %vm3304_vm7 = vmmov %vm3301_vm1 }
 0x3a0   : > { %v1421_v10 = vld [vmem:[#allocation3 + $0x8] sm:$0xf]  ;;  %vm3305_vm6 = vmmov %vm3301_vm1 }
 0x3a1   : > { %vm3306_vm15 = vmmov %vm3301_vm1 }
 0x3a2   : > { %vm3307_vm4 = vmmov %vm3301_vm1 }
 0x3a3   : > { %vm3308_vm8 = vmmov %vm3301_vm1 }
 0x3a4   : > { %vm3311_vm9 = vmmov %vm3301_vm1 }
 0x3a5   : > { %v1417_v11 = vpop.f32.mrf.mxu0 }
 0x3a6   : > { %v1428_v54 = vadd.f32 %v1421_v10, %v1417_v11 }
 0x3a8   : > { %1430 = vst.msk [vmem:[#allocation3 + $0x8] sm:$0xf] %vm3300_vm10, %v1428_v54  ;;  %v1462_v25 = vpop.f32.mrf.mxu1 }
 0x3ae   : > { %v1397_v12 = vpop.f32.mrf.mxu3 }
 0x3af   : > { %v1424_v13 = vrot.slane %v1397_v12, 4  ;;  %v1506_v14 = vld [vmem:[#allocation3 + $0x8] sm:$0xf] }
 0x3b5   : > { %v1377_v15 = vpop.f32.mrf.mxu2 }
 0x3b6   : > { %v1425_v17 = vsel %vm215_vm0, %v1377_v15, %v1424_v13  ;;  %v1502_v18 = vpop.f32.mrf.mxu3 }
 0x3b7   : > { %v1427_v19 = vadd.f32 %v1425_v17, %v1331_v39  ;;  %v1513_v21 = vadd.f32 %v1506_v14, %v1502_v18 }
 0x3b9   : > { %1515 = vst.msk [vmem:[#allocation3 + $0x8] sm:$0xf] %vm3301_vm1, %v1513_v21 }
 0x3bd   : > { %v1482_v22 = vpop.f32.mrf.mxu2 }
 0x3be   : > { %v1509_v24 = vrot.slane %v1482_v22, 4 }
 0x3c0   : > { %v1510_v26 = vsel %vm215_vm0, %v1462_v25, %v1509_v24  ;;  %v1665_v30 = vld [vmem:[#allocation3 + $0x8] sm:$0xf] }
 0x3c1   : > { %v1512_v27 = vadd.f32 %v1510_v26, %v1427_v19  ;;  %v1641_v35 = vpop.f32.mrf.mxu1 }
 0x3c2   : > { %v1668_v53 = vrot.slane %v1641_v35, 4 }
 0x3c6   : > { %v1661_v33 = vpop.f32.mrf.mxu2 }
 0x3c7   : > { %v1672_v34 = vadd.f32 %v1665_v30, %v1661_v33 }
 0x3c9   : > { %1674 = vst.msk [vmem:[#allocation3 + $0x8] sm:$0xf] %vm3302_vm11, %v1672_v34  ;;  %v1621_v37 = vpop.f32.mrf.mxu0 }
 0x3ca   : > { %v1669_v58 = vsel %vm215_vm0, %v1621_v37, %v1668_v53 }
 0x3cb   : > { %v1671_v44 = vadd.f32 %v1669_v58, %v1512_v27 }
 0x3d0   : > { %v1761_v42 = vld [vmem:[#allocation3 + $0x8] sm:$0xf] }
 0x3de   : > { %v1717_v20 = vpop.f32.mrf.mxu3 }
 0x3e0   : > { %v1757_v43 = vpop.f32.mrf.mxu1 }
 0x3e1   : > { %v1768_v41 = vadd.f32 %v1761_v42, %v1757_v43  ;;  %v1737_v45 = vpop.f32.mrf.mxu0 }
 0x3e2   : > { %v1764_v56 = vrot.slane %v1737_v45, 4 }
 0x3e3   : > { %1770 = vst.msk [vmem:[#allocation3 + $0x8] sm:$0xf] %vm3303_vm2, %v1768_v41 }
 0x3e4   : > { %v1765_v1 = vsel %vm215_vm0, %v1717_v20, %v1764_v56 }
 0x3e5   : > { %v1767_v2 = vadd.f32 %v1765_v1, %v1671_v44 }
 0x3e7   : > { %v1822_v31 = vpop.f32.mrf.mxu3 }
 0x3e8   : > { %v1849_v16 = vrot.slane %v1822_v31, 4 }
 0x3ea   : > { %v1842_v23 = vpop.f32.mrf.mxu0  ;;  %v1846_v46 = vld [vmem:[#allocation3 + $0x8] sm:$0xf] }
 0x3eb   : > { %v1853_v47 = vadd.f32 %v1846_v46, %v1842_v23 }
 0x3ed   : > { %1855 = vst.msk [vmem:[#allocation3 + $0x8] sm:$0xf] %vm3304_vm7, %v1853_v47  ;;  %v2264_v47 = vpop.permute.xlu0 %2263 }
 0x3ef   : > { %v2001_v48 = vpop.f32.mrf.mxu3 }
 0x3f0   : > { %v1802_v51 = vpop.f32.mrf.mxu2 }
 0x3f1   : > { %v1850_v62 = vsel %vm215_vm0, %v1802_v51, %v1849_v16 }
 0x3f2   : > { %v1852_v4 = vadd.f32 %v1850_v62, %v1767_v2 }
 0x3f4   : > { %v2005_v49 = vld [vmem:[#allocation3 + $0x8] sm:$0xf] }
 0x3f5   : > { %v2012_v50 = vadd.f32 %v2005_v49, %v2001_v48 }
 0x3f7   : > { %2014 = vst.msk [vmem:[#allocation3 + $0x8] sm:$0xf] %vm3305_vm6, %v2012_v50 }
 0x3f8   : > { %v1981_v0 = vpop.f32.mrf.mxu2 }
 0x3f9   : > { %v2008_v61 = vrot.slane %v1981_v0, 4 }
 0x3fa   : > { %v1961_v52 = vpop.f32.mrf.mxu1 }
 0x3fb   : > { %v2009_v40 = vsel %vm215_vm0, %v1961_v52, %v2008_v61  ;;  %v2266_v52 = vpop.permute.xlu0 %2265 }
 0x3fc   : > { %v2011_v7 = vadd.f32 %v2009_v40, %v1852_v4  ;;  %v2268_v56 = vrot.slane %v2266_v52, 4 }
 0x3fe   : > { %v2101_v32 = vld [vmem:[#allocation3 + $0x8] sm:$0xf] }
 0x408   : > { %v2077_v59 = vpop.f32.mrf.mxu1 }
 0x409   : > { %v2057_v60 = vpop.f32.mrf.mxu0  ;;  %v2104_v63 = vrot.slane %v2077_v59, 4 }
 0x40b   : > { %v2105_v6 = vsel %vm215_vm0, %v2057_v60, %v2104_v63 }
 0x40c   : > { %v2107_v11 = vadd.f32 %v2105_v6, %v2011_v7 }
 0x40d   : > { %v2097_v55 = vpop.f32.mrf.mxu2 }
 0x40e   : > { %v2108_v57 = vadd.f32 %v2101_v32, %v2097_v55  ;;  %v2267_v55 = vrot.slane %v2264_v47, 4 }
 0x410   : > { %2110 = vst.msk [vmem:[#allocation3 + $0x8] sm:$0xf] %vm3306_vm15, %v2108_v57  ;;  %v2269_v61 = vsel %vm215_vm0, %v2267_v55, %v2268_v56 }
 0x411   : > { %v2270_v63 = vsel %vm3310_vm3, %v2264_v47, %v2269_v61 }
 0x417   : > { %v2186_v5 = vld [vmem:[#allocation3 + $0x8] sm:$0xf]  ;;  %v2142_v9 = vpop.f32.mrf.mxu3 }
 0x418   : > { %v2182_v36 = vpop.f32.mrf.mxu1 }
 0x419   : > { %v2162_v8 = vpop.f32.mrf.mxu0  ;;  %v2193_v39 = vadd.f32 %v2186_v5, %v2182_v36 }
 0x41a   : > { %v2189_v10 = vrot.slane %v2162_v8, 4 }
 0x41b   : > { %2195 = vst.msk [vmem:[#allocation3 + $0x8] sm:$0xf] %vm3307_vm4, %v2193_v39 }
 0x41c   : > { %v2190_v54 = vsel %vm215_vm0, %v2142_v9, %v2189_v10 }
 0x41d   : > { %v2192_v12 = vadd.f32 %v2190_v54, %v2107_v11 }
 0x41f   : > { %2200 = vst [vmem:[#allocation1] ss:$2 sm:$0xff] %v2192_v12 }
 0x422   : > { %v2197_v13 = vld [vmem:[#allocation3 + $0x8] sm:$0xf] }
 0x423   : > { %2202 = vst [vmem:[#allocation1 + $0x10] ss:$2 sm:$0xff] %v2197_v13 }
 0x426   : > { %v2203_v14 = vld.sshfl [vmem:[#allocation1] sm:$0xff pattern:$0x75316420]  ;;  %v2204_v15 = vld.sshfl [vmem:[#allocation1 + $0x8] sm:$0xff pattern:$0x75316420] }
 0x427   : > { %v2209_v17 = vsel %vm2881_vm12, %v2203_v14, 0.0  ;;  %v2210_v18 = vsel %vm2885_vm13, %v2204_v15, 0.0  ;;  %vm3309_vm12 = vmmov %vm3301_vm1 }
 0x428   : > { %v2212_v19 = vsel %vm215_vm0, %v2209_v17, 0.0  ;;  %v2213_v21 = vsel %vm215_vm0, %v2210_v18, 0.0  ;;  %v2220_v22 = vmul.f32 %v2209_v17, %v2209_v17  ;;  %v2221_v24 = vmul.f32 %v2210_v18, %v2210_v18 }
 0x429   : > { %v2214_v27 = vadd.f32 %v2213_v21, %v2212_v19 }
 0x42a   : > { %v2205_v25 = vld.sshfl [vmem:[#allocation1 + $0x10] sm:$0xff pattern:$0x75316420]  ;;  %v2223_v30 = vsel %vm215_vm0, %v2220_v22, 0.0  ;;  %v2224_v33 = vsel %vm215_vm0, %v2221_v24, 0.0 }
 0x42b   : > { %v2211_v26 = vsel %vm2893_vm14, %v2205_v25, 0.0  ;;  %v2225_v35 = vadd.f32 %v2224_v33, %v2223_v30 }
 0x42c   : > { %v2215_v28 = vsel %vm3308_vm8, %v2211_v26, 0.0  ;;  %v2222_v34 = vmul.f32 %v2211_v26, %v2211_v26 }
 0x42d   : > { %v2216_v29 = vadd.f32 %v2215_v28, %v2214_v27 }
 0x42e   : > { %v2226_v37 = vsel %vm3309_vm12, %v2222_v34, 0.0 }
 0x42f   : > { %2217 = vadd.xlane.f32.xlu2 %v2216_v29  ;;  %v2227_v42 = vadd.f32 %v2226_v37, %v2225_v35 }
 0x431   : > { %2228 = vadd.xlane.f32.xlu1 %v2227_v42 }
 0x4a2   : > { %v2218_v43 = vpop.xlane.xlu2 %2217 }
 0x4a3   : > { %v2219_v41 = vmul.f32 0.00390625, %v2218_v43 }
 0x4a4   : > { %v2229_v38 = vpop.xlane.xlu1 %2228 }
 0x4a5   : > { %v2231_v45 = vmul.f32 %v2219_v41, %v2219_v41  ;;  %v2230_v20 = vmul.f32 0.00390625, %v2229_v38  ;;  %v2238_v32 = vperm.slane %v2219_v41, %v2905_v3 }
 0x4a7   : > { %v2232_v31 = vsub.f32 %v2230_v20, %v2231_v45  ;;  %v2240_v58 = vsub.f32 %v2192_v12, %v2238_v32  ;;  %v2241_v16 = vsub.f32 %v2197_v13, %v2238_v32 }
 0x4a9   : > { %v2233_v23 = vmax.f32 %v2232_v31, 0.0 }
 0x4ab   : > { %v2242_v46 = vadd.f32 1e-05, %v2233_v23 }
 0x4ad   : > { %2543 = vrsqrt.f32 %v2242_v46  ;;  %vm2249_vm14 = vweird.f32 %v2242_v46 }
 0x4b3   : > { %v2544_v48 = vpop.eup %2543 }
 0x4b4   : > { %v2244_v49 = vmul.f32 %v2544_v48, %v2242_v46  ;;  %vm2250_vm13 = vweird.f32 %v2544_v48 }
 0x4b5   : > { %vm2251_vm5 = vmor %vm2249_vm14, %vm2250_vm13 }
 0x4b6   : > { %v2245_v50 = vmul.f32 %v2544_v48, %v2244_v49 }
 0x4b8   : > { %v2246_v51 = vmul.f32 0.5, %v2245_v50 }
 0x4ba   : > { %v2247_v0 = vsub.f32 1.5, %v2246_v51 }
 0x4bc   : > { %v2248_v53 = vmul.f32 %v2544_v48, %v2247_v0 }
 0x4be   : > { %v2252_v57 = vsel %vm2251_vm5, %v2544_v48, %v2248_v53 }
 0x4bf   : > { %v2257_v59 = vperm.slane %v2252_v57, %v2905_v3 }
 0x4c1   : > { %v2259_v60 = vmul.f32 %v2257_v59, %v2240_v58  ;;  %v2260_v1 = vmul.f32 %v2257_v59, %v2241_v16 }
 0x4c3   : > { %v2261_v44 = vmax.f32 %v2259_v60, 0.0  ;;  %v2262_v62 = vmax.f32 %v2260_v1, 0.0 }
 0x4c5   : > { %v2274_v2 = vadd.f32 %v2266_v52, %v2262_v62  ;;  %v2273_v40 = vadd.f32 %v2270_v63, %v2261_v44 }
 0x4c7   : > { %2276 = vst.msk [vmem:[%s190_s19 + $0x8] sm:$0xf] %vm3311_vm9, %v2274_v2 }
 0x4c8   : > { %2275 = vst [vmem:[%s190_s19] sm:$0xff] %v2273_v40 }
 0x4c9   : > { %2572 = shalt.err (!%p2569_p3)
}
 0x4ca   : > { %2488 = dma.vmem_to_hbm [thread:$0]  (%p2686_p5), %s2292_s13, 192, %s2294_s28, %s2278_s29  }
 0x4cb PF: > { %p2494_p4 = scmp.ge.s32.totalorder %s2607_s18, 2  ;;  %s2305_s6 = sand.u32 1, %s2595_s15  }
 0x4cc   : > { %s2306_s7 = scalar_lea.sflag [#allocation5], %s2305_s6 }
 0x4cd   : > { %p2491_p7 = pnand %p2494_p4, %p2690_p6 }
 0x4cf   : > { %p2492_p8 = pneg %p2491_p7 }
 0x4d1   : > { %2590 = dma.done.wait (%p2492_p8), %s2306_s7, 192  }
 0x4d2   : > { %2592 = vsyncadd (%p2492_p8), %s2306_s7, 4294967104  ;;  %p14_p9 = scmp.ge.s32.totalorder %s2673_s21, 4   ;;  %s3312_s15 = smov %s2599_s16 }
 0x4d3   : > { %s3313_s16 = smov %s2603_s17  ;;  %s3314_s17 = smov %s2684_s24 }
 0x4d4   : > { %s3315_s18 = smov %s2673_s21  ;;  %16 = sbr.rel (!%p14_p9) target bundleno = 3 (0x3), region = 113 }
 0x4d9   :  { %2312 = vsyncpa [#allocation5], 1 }
 0x4da   :  { %2314 = vsyncpa [#allocation5 + $0x1], 1 }

</bundles_post_ra>
